<compile_context>
chip_gen: v5e
topology: v5e:2x2
jax: 0.10.0
libtpu: 0.0.40
codegen_flags: <defaults>
</compile_context>

<pallas_src>
import jax
import jax.numpy as jnp
from jax.experimental import pallas as pl
from jax.experimental.pallas import tpu as pltpu


# ----------------------------------------------------------------------------
# Pallas kernel factory: DANNLayer forward (KB fused units per grid step)
# ----------------------------------------------------------------------------
def _make_dann_kernel(kb, gate_stride):
    """gate_stride: units sharing one gate row (F for whole-branch fusion,
    KB when the step covers a fraction of one branch)."""

    def kernel(x_ref, wk_ref, bw_ref, gate_ref, bs_ref, o_ref, acc_ref):
        k = pl.program_id(2)

        @pl.when(k == 0)
        def _init():
            acc_ref[...] = jnp.zeros_like(acc_ref)

        x = x_ref[...]                       # (TB, D)
        acc = acc_ref[...]                   # (TB, TN) f32
        for u in range(kb):                  # unrolled at trace time
            # Branch unit u for every neuron in this tile: MXU matmul.
            h = jnp.dot(x, wk_ref[u], preferred_element_type=jnp.float32)
            bw_u = bw_ref[u]                 # (2, TN): row 0 = bias, row 1 = soma w
            h = jnp.maximum(h + bw_u[0:1, :], 0.0)          # bias + ReLU (VPU)
            # Dendritic gate (per batch/branch/neuron) and soma weight, then
            # sum over units via the accumulation.
            acc = acc + h * gate_ref[u // gate_stride] * bw_u[1:2, :]
        acc_ref[...] = acc

        @pl.when(k == pl.num_programs(2) - 1)
        def _finalize():
            o_ref[...] = (acc_ref[...] + bs_ref[...]).astype(o_ref.dtype)

    return kernel


# ----------------------------------------------------------------------------
# Init-time parameter packing (hoisted out of the per-call path)
# ----------------------------------------------------------------------------
def pack_dann_layer_params(w_branch, b_branch, w_soma, b_soma, *,
                           matmul_dtype=jnp.bfloat16):
    """Pack DANNLayer parameters for the Pallas kernel. Call ONCE at init.

    w_branch: (N, Br, F, D)   b_branch: (N, Br, F)
    w_soma:   (N, Br*F)       b_soma:   (N,)
    Returns (wk, bw, bs):
      wk[k, d, n] = w_branch[n, r, f, d]         (K, D, N), matmul_dtype
      bw[k, 0, n] = b_branch[n, r, f]            (K, 2, N), f32
      bw[k, 1, n] = w_soma[n, k]
      bs[0, n]    = b_soma[n]                    (1, N), f32
    with k = r*F + f (same unit ordering as torch.cat of the branch outputs).
    """
    n_neurons, n_branches, branch_size, d_in = w_branch.shape
    K = n_branches * branch_size
    wk = jnp.transpose(w_branch, (1, 2, 3, 0)).reshape(K, d_in, n_neurons)
    wk = wk.astype(matmul_dtype)
    bb = jnp.transpose(b_branch, (1, 2, 0)).reshape(K, n_neurons)
    ws = jnp.transpose(w_soma).reshape(K, n_neurons)
    bw = jnp.stack([bb, ws], axis=1).astype(jnp.float32)      # (K, 2, N)
    bs = b_soma.reshape(1, n_neurons).astype(jnp.float32)
    return wk, bw, bs


# ----------------------------------------------------------------------------
# Tile / fusion selection helpers
# ----------------------------------------------------------------------------
def _pick_tile(dim, cap, align):
    """Largest align-multiple tile <= cap dividing dim, else the full dim."""
    if dim <= cap:
        return dim
    t = (cap // align) * align
    while t >= align:
        if dim % t == 0:
            return t
        t -= align
    return dim  # untiled fallback (block == full dim is always legal)


def _maybe_split_tb_for_megacore(B, TB, N, TN, align):
    """If the parallel grid is degenerate (1x1), try halving the batch tile so
    v7x's second TensorCore gets work. v5e/v6e (1 TC) are unaffected."""
    if (B // TB) * (N // TN) >= 2:
        return TB
    half = TB // 2
    if half >= align and half % align == 0 and B % half == 0:
        return half
    return TB


def _pick_kb(K, F, Br, D, TN, w_bytes, budget_bytes):
    """Units fused per grid step. Either whole branches (KB = RB*F) or a
    divisor of F, so each step's units map to a contiguous gate-row block."""
    def w_block_bytes(kb):
        return 2 * kb * D * TN * w_bytes          # double-buffered weight block
    for rb in range(Br, 0, -1):                   # prefer whole-branch fusion
        if Br % rb == 0 and w_block_bytes(rb * F) <= budget_bytes:
            return rb * F, rb, F
    for fb in range(F, 0, -1):                    # partial-branch fallback
        if F % fb == 0 and w_block_bytes(fb) <= budget_bytes:
            return fb, 1, fb
    return 1, 1, 1


def _vmem_need_bytes(TB, TN, D, KB, gate_rows, w_bytes, out_bytes):
    x_b = TB * D * w_bytes
    wk_b = KB * D * TN * w_bytes
    bw_b = KB * 2 * TN * 4
    g_b = gate_rows * TB * TN * 4
    bs_b = TN * 4
    out_b = TB * TN * out_bytes
    acc_b = TB * TN * 4
    return 2 * (x_b + wk_b + bw_b + g_b + bs_b + out_b) + acc_b


def _pallas_profitable(n_neurons, d_in):
    """Tiny layers are lane-sparse / grid-overhead bound; use plain XLA."""
    return n_neurons >= 128 and d_in >= 32


# ----------------------------------------------------------------------------
# DANNLayer forward via the Pallas kernel
# ----------------------------------------------------------------------------
def dann_layer_forward(x, gate_values, packed_params, *,
                       n_neurons, n_branches, branch_size,
                       batch_tile=256, neuron_tile=512,
                       weight_block_budget_bytes=10 * 1024 * 1024):
    """x: (B, D).  gate_values: (B, N*Br) or already-laid-out (Br, B, N)."""
    wk, bw, bs = packed_params
    B, D = x.shape
    F = branch_size
    Br = n_branches
    K = Br * F
    out_dtype = x.dtype
    w_bytes = jnp.dtype(wk.dtype).itemsize
    out_bytes = jnp.dtype(out_dtype).itemsize

    sub_align = 16 if wk.dtype == jnp.bfloat16 else 8
    TB = _pick_tile(B, batch_tile, sub_align)
    TN = _pick_tile(n_neurons, neuron_tile, 128)
    TB = _maybe_split_tb_for_megacore(B, TB, n_neurons, TN, sub_align)

    KB, RB, FB = _pick_kb(K, F, Br, D, TN, w_bytes, weight_block_budget_bytes)

    # Gates in (Br, B, N) layout (no branch_size expansion).
    if gate_values.ndim == 2:
        gate_rbn = jnp.transpose(
            gate_values.reshape(B, n_neurons, Br).astype(jnp.float32), (2, 0, 1))
    else:
        gate_rbn = gate_values.astype(jnp.float32)

    x_c = x.astype(wk.dtype)

    if FB == F:                               # whole-branch fusion
        gate_block = (RB, TB, TN)
        gate_map = lambda i, j, k: (k, i, j)
        gate_stride = F
        gate_rows = RB
    else:                                     # partial branch per step
        steps_per_branch = F // FB
        gate_block = (1, TB, TN)
        gate_map = lambda i, j, k: (k // steps_per_branch, i, j)
        gate_stride = KB
        gate_rows = 1

    need = _vmem_need_bytes(TB, TN, D, KB, gate_rows, w_bytes, out_bytes)
    vmem_limit = int(min(max(2 * need, 32 * 1024 * 1024), 64 * 1024 * 1024))

    grid = (B // TB, n_neurons // TN, K // KB)
    out = pl.pallas_call(
        _make_dann_kernel(KB, gate_stride),
        out_shape=jax.ShapeDtypeStruct((B, n_neurons), out_dtype),
        grid=grid,
        in_specs=[
            pl.BlockSpec((TB, D), lambda i, j, k: (i, 0)),           # x
            pl.BlockSpec((KB, D, TN), lambda i, j, k: (k, 0, j)),    # branch W block
            pl.BlockSpec((KB, 2, TN), lambda i, j, k: (k, 0, j)),    # bias+soma W
            pl.BlockSpec(gate_block, gate_map),                      # gates (per branch)
            pl.BlockSpec((1, TN), lambda i, j, k: (0, j)),           # soma bias
        ],
        out_specs=pl.BlockSpec((TB, TN), lambda i, j, k: (i, j)),
        scratch_shapes=[pltpu.VMEM((TB, TN), jnp.float32)],
        compiler_params=pltpu.CompilerParams(
            dimension_semantics=("parallel", "parallel", "arbitrary"),
            vmem_limit_bytes=vmem_limit),
    )(x_c, wk, bw, gate_rbn, bs)
    return out


# ----------------------------------------------------------------------------
# Pure-JAX reference for the DANN layer (mirrors the PyTorch loop structure)
# ----------------------------------------------------------------------------
def dann_layer_reference(x, w_branch, b_branch, w_soma, b_soma, gate_values, *,
                         n_neurons, n_branches, branch_size):
    B = x.shape[0]
    h = jnp.einsum("bd,nrfd->bnrf", x, w_branch) + b_branch[None]
    h = jnp.maximum(h, 0.0)
    gate = gate_values.reshape(B, n_neurons, n_branches)
    h = h * gate[..., None]
    combined = h.reshape(B, n_neurons, n_branches * branch_size)
    return jnp.einsum("bnk,nk->bn", combined, w_soma) + b_soma[None]


# ----------------------------------------------------------------------------
# Plain-JAX glue for the rest of HypernetworkGatedDANN
# ----------------------------------------------------------------------------
def gating_forward(x, hw, hb, ow, ob):
    hidden = jnp.maximum(x @ hw.T + hb, 0.0)
    return jax.nn.sigmoid(hidden @ ow.T + ob)               # (B, N*Br)


def gating_forward_rbn(x, hw, hb, ow, ob, n_neurons, n_branches):
    """Gates produced directly in (Br, B, N) layout for the Pallas kernel
    (no per-call activation transpose). Gate index g = n*Br + r."""
    hidden = jnp.maximum(x @ hw.T + hb, 0.0)                 # (B, H)
    ow_r = ow.reshape(n_neurons, n_branches, -1)             # (N, Br, H)
    ob_r = jnp.transpose(ob.reshape(n_neurons, n_branches))  # (Br, N)
    logits = jnp.einsum("bh,nrh->rbn", hidden, ow_r) + ob_r[:, None, :]
    return jax.nn.sigmoid(logits)                            # (Br, B, N)


def hypernetwork_forward(context, hyper_params):
    h = context
    for (w, b) in hyper_params[:-1]:
        # nn.Dropout is eval-mode identity here.
        h = jnp.maximum(h @ w.T + b, 0.0)
    w, b = hyper_params[-1]
    return h @ w.T + b


def unpack_gating_weights(vec, input_size, n_gates, hidden_size):
    """Mirror of GatingNetwork.set_weights slicing."""
    i = 0
    hw = vec[i:i + hidden_size * input_size].reshape(hidden_size, input_size)
    i += hidden_size * input_size
    hb = vec[i:i + hidden_size]
    i += hidden_size
    ow = vec[i:i + n_gates * hidden_size].reshape(n_gates, hidden_size)
    i += n_gates * hidden_size
    ob = vec[i:i + n_gates]
    i += n_gates
    return (hw, hb, ow, ob), i


def hypernet_gated_dann_forward(x, context, params, *, main_layers,
                                gating_hidden, use_pallas=True):
    """Shared-context forward path (torch 'contexts_same' branch).
    # TODO(synk): the per-sample heterogeneous-context path (PyTorch Python
    # loop over the batch, re-setting gating weights per sample) is not
    # implemented.
    """
    input_size = x.shape[1]
    wvec = hypernetwork_forward(context.reshape(1, -1), params["hyper"])[0]
    cur = x
    idx = 0
    for li, (n_neurons, n_branches, branch_size) in enumerate(main_layers):
        n_gates = n_neurons * n_branches
        (hw, hb, ow, ob), used = unpack_gating_weights(
            wvec[idx:], input_size, n_gates, gating_hidden)
        idx += used
        d_in = cur.shape[1]
        if use_pallas and _pallas_profitable(n_neurons, d_in):
            gates = gating_forward_rbn(x, hw, hb, ow, ob, n_neurons, n_branches)
            cur = dann_layer_forward(
                cur, gates, params["dann_packed"][li],
                n_neurons=n_neurons, n_branches=n_branches,
                branch_size=branch_size)
        else:
            gates = gating_forward(x, hw, hb, ow, ob)
            wbr, bbr, wsm, bsm = params["dann_raw"][li]
            cur = dann_layer_reference(
                cur, wbr, bbr, wsm, bsm, gates,
                n_neurons=n_neurons, n_branches=n_branches,
                branch_size=branch_size)
    w_out, b_out = params["out"]
    return cur @ w_out.T + b_out


# ----------------------------------------------------------------------------
if __name__ == "__main__":
    key = jax.random.PRNGKey(0)
    keys = iter(jax.random.split(key, 64))

    # Small but lane-dense config (128 neurons -> full 128-lane output tiles).
    input_size = 64
    context_size = 16
    main_layers = [(128, 4, 8), (128, 2, 8)]   # (n_neurons, n_branches, branch_size)
    output_size = 3
    gating_hidden = 16
    hyper_hidden = [32, 48]
    B = 8

    def uniform(k, shape, bound):
        return jax.random.uniform(k, shape, jnp.float32, -bound, bound)

    # ---- DANN layer params (PyTorch Linear-style uniform init), packed once ----
    dann_raw, dann_packed = [], []
    cur_size = input_size
    for (n, br, f) in main_layers:
        bd = 1.0 / (cur_size ** 0.5)
        w_branch = uniform(next(keys), (n, br, f, cur_size), bd)
        b_branch = uniform(next(keys), (n, br, f), bd)
        bs_ = 1.0 / ((br * f) ** 0.5)
        w_soma = uniform(next(keys), (n, br * f), bs_)
        b_soma = uniform(next(keys), (n,), bs_)
        dann_raw.append((w_branch, b_branch, w_soma, b_soma))
        dann_packed.append(pack_dann_layer_params(w_branch, b_branch, w_soma, b_soma))
        cur_size = n

    # ---- output layer ----
    bd = 1.0 / (cur_size ** 0.5)
    w_out = uniform(next(keys), (output_size, cur_size), bd)
    b_out = uniform(next(keys), (output_size,), bd)

    # ---- hypernetwork: N(0,.05)/0 hidden, N(0,.3)/2.0 final ----
    total_gating_params = 0
    for (n, br, f) in main_layers:
        n_gates = n * br
        total_gating_params += (input_size * gating_hidden + gating_hidden
                                + gating_hidden * n_gates + n_gates)
    hyper = []
    prev = context_size
    for hs in hyper_hidden:
        hyper.append((0.05 * jax.random.normal(next(keys), (hs, prev), jnp.float32),
                      jnp.zeros((hs,), jnp.float32)))
        prev = hs
    hyper.append((0.3 * jax.random.normal(next(keys), (total_gating_params, prev),
                                          jnp.float32),
                  2.0 * jnp.ones((total_gating_params,), jnp.float32)))

    params = {"hyper": hyper, "dann_packed": dann_packed, "dann_raw": dann_raw,
              "out": (w_out, b_out)}

    x = jax.random.normal(next(keys), (B, input_size), jnp.float32)
    context = jax.random.normal(next(keys), (context_size,), jnp.float32)

    # ---- check 1: standalone DANN layer kernel vs bf16-matched reference ----
    n, br, f = main_layers[0]
    gates0 = jax.random.uniform(next(keys), (B, n * br), jnp.float32, 0.0, 1.0)
    out_k = dann_layer_forward(x, gates0, dann_packed[0],
                               n_neurons=n, n_branches=br, branch_size=f)
    out_k = jax.block_until_ready(out_k)
    wbr0, bbr0, wsm0, bsm0 = dann_raw[0]
    ref_k = dann_layer_reference(
        x.astype(jnp.bfloat16).astype(jnp.float32),
        wbr0.astype(jnp.bfloat16).astype(jnp.float32),
        bbr0, wsm0, bsm0, gates0,
        n_neurons=n, n_branches=br, branch_size=f)
    assert out_k.shape == (B, n)
    assert jnp.allclose(out_k, ref_k, atol=1e-3, rtol=1e-3), (
        f"DANN layer max abs err = {jnp.max(jnp.abs(out_k - ref_k))}")

    # ---- check 2: full HypernetworkGatedDANN forward (shared-context path) ----
    y = hypernet_gated_dann_forward(x, context, params, main_layers=main_layers,
                                    gating_hidden=gating_hidden, use_pallas=True)
    y = jax.block_until_ready(y)
    y_ref = hypernet_gated_dann_forward(x, context, params, main_layers=main_layers,
                                        gating_hidden=gating_hidden, use_pallas=False)
    assert y.shape == (B, output_size)
    assert jnp.allclose(y, y_ref, atol=5e-2, rtol=5e-2), (
        f"full model max abs err = {jnp.max(jnp.abs(y - y_ref))}")

    print("KERNEL_OK")
</pallas_src>

<mosaic_0001>
module attributes {stable_mosaic.version = 11 : i64} {
  func.func @kernel(%arg0: i32, %arg1: i32, %arg2: i32, %arg3: memref<8x64xbf16, #tpu.memory_space<vmem>>, %arg4: memref<32x64x128xbf16, #tpu.memory_space<vmem>>, %arg5: memref<32x2x128xf32, #tpu.memory_space<vmem>>, %arg6: memref<4x8x128xf32, #tpu.memory_space<vmem>>, %arg7: memref<1x128xf32, #tpu.memory_space<vmem>>, %arg8: memref<8x128xf32, #tpu.memory_space<vmem>>, %arg9: memref<8x128xf32, #tpu.memory_space<vmem>>) attributes {dimension_semantics = [#tpu.dimension_semantics<parallel>, #tpu.dimension_semantics<parallel>, #tpu.dimension_semantics<arbitrary>], iteration_bounds = array<i64: 1, 1, 1>, scalar_prefetch = 0 : i64, scratch_operands = 1 : i64, tpu.core_type = #tpu.core_type<tc>, window_params = [{transform_indices = @transform_0, window_bounds = array<i64: 8, 64>}, {transform_indices = @transform_1, window_bounds = array<i64: 32, 64, 128>}, {transform_indices = @transform_2, window_bounds = array<i64: 32, 2, 128>}, {transform_indices = @transform_3, window_bounds = array<i64: 4, 8, 128>}, {transform_indices = @transform_4, window_bounds = array<i64: 1, 128>}, {transform_indices = @transform_5, window_bounds = array<i64: 8, 128>}]} {
    %c0_i32 = arith.constant 0 : i32
    %0 = arith.cmpi eq, %arg2, %c0_i32 : i32
    %1 = arith.extui %0 : i1 to i32
    %c0_i32_0 = arith.constant 0 : i32
    %2 = arith.cmpi ne, %1, %c0_i32_0 : i32
    scf.if %2 {
      %cst_328 = arith.constant 0.000000e+00 : f32
      %553 = vector.broadcast %cst_328 : f32 to vector<8x128xf32>
      %c0_329 = arith.constant 0 : index
      %c0_330 = arith.constant 0 : index
      %554 = vector.load %arg9[%c0_329, %c0_330] : memref<8x128xf32, #tpu.memory_space<vmem>>, vector<8x128xf32>
      tpu.vector_store %arg9[%c0_329, %c0_330], %553 {strides = array<i32>} : memref<8x128xf32, #tpu.memory_space<vmem>>, vector<8x128xf32>,
    } else {
    }
    %c0 = arith.constant 0 : index
    %c0_1 = arith.constant 0 : index
    %3 = vector.load %arg3[%c0, %c0_1] : memref<8x64xbf16, #tpu.memory_space<vmem>>, vector<8x64xbf16>
    %c0_2 = arith.constant 0 : index
    %c0_3 = arith.constant 0 : index
    %4 = vector.load %arg9[%c0_2, %c0_3] : memref<8x128xf32, #tpu.memory_space<vmem>>, vector<8x128xf32>
    %c0_4 = arith.constant 0 : index
    %c0_5 = arith.constant 0 : index
    %c0_6 = arith.constant 0 : index
    %5 = vector.load %arg4[%c0_4, %c0_5, %c0_6] : memref<32x64x128xbf16, #tpu.memory_space<vmem>>, vector<1x64x128xbf16>
    %6 = vector.shape_cast %5 : vector<1x64x128xbf16> to vector<64x128xbf16>
    %cst = arith.constant dense<0.000000e+00> : vector<8x128xf32>
    %7 = tpu.matmul %3, %6, %cst {dimension_numbers = #tpu.dot_dimension_numbers<[1], [0], [0], [1], [0, 0, 1, 1], [], []>} : vector<8x64xbf16>, vector<64x128xbf16>, vector<8x128xf32> -> vector<8x128xf32>
    %c0_7 = arith.constant 0 : index
    %c0_8 = arith.constant 0 : index
    %c0_9 = arith.constant 0 : index
    %8 = vector.load %arg5[%c0_7, %c0_8, %c0_9] : memref<32x2x128xf32, #tpu.memory_space<vmem>>, vector<1x2x128xf32>
    %9 = vector.shape_cast %8 : vector<1x2x128xf32> to vector<2x128xf32>
    %10 = vector.extract_strided_slice %9 {offsets = [0, 0], sizes = [1, 128], strides = [1, 1]} : vector<2x128xf32> to vector<1x128xf32>
    %11 = vector.broadcast %10 : vector<1x128xf32> to vector<8x128xf32>
    %12 = arith.addf %7, %11 : vector<8x128xf32>
    %cst_10 = arith.constant 0.000000e+00 : f32
    %13 = vector.broadcast %cst_10 : f32 to vector<8x128xf32>
    %14 = arith.maximumf %12, %13 : vector<8x128xf32>
    %c0_11 = arith.constant 0 : index
    %c0_12 = arith.constant 0 : index
    %c0_13 = arith.constant 0 : index
    %15 = vector.load %arg6[%c0_11, %c0_12, %c0_13] : memref<4x8x128xf32, #tpu.memory_space<vmem>>, vector<1x8x128xf32>
    %16 = vector.shape_cast %15 : vector<1x8x128xf32> to vector<8x128xf32>
    %17 = arith.mulf %14, %16 : vector<8x128xf32>
    %18 = vector.extract_strided_slice %9 {offsets = [1, 0], sizes = [1, 128], strides = [1, 1]} : vector<2x128xf32> to vector<1x128xf32>
    %19 = vector.broadcast %18 : vector<1x128xf32> to vector<8x128xf32>
    %20 = arith.mulf %17, %19 : vector<8x128xf32>
    %21 = arith.addf %4, %20 : vector<8x128xf32>
    %c1 = arith.constant 1 : index
    %c0_14 = arith.constant 0 : index
    %c0_15 = arith.constant 0 : index
    %22 = vector.load %arg4[%c1, %c0_14, %c0_15] : memref<32x64x128xbf16, #tpu.memory_space<vmem>>, vector<1x64x128xbf16>
    %23 = vector.shape_cast %22 : vector<1x64x128xbf16> to vector<64x128xbf16>
    %cst_16 = arith.constant dense<0.000000e+00> : vector<8x128xf32>
    %24 = tpu.matmul %3, %23, %cst_16 {dimension_numbers = #tpu.dot_dimension_numbers<[1], [0], [0], [1], [0, 0, 1, 1], [], []>} : vector<8x64xbf16>, vector<64x128xbf16>, vector<8x128xf32> -> vector<8x128xf32>
    %c1_17 = arith.constant 1 : index
    %c0_18 = arith.constant 0 : index
    %c0_19 = arith.constant 0 : index
    %25 = vector.load %arg5[%c1_17, %c0_18, %c0_19] : memref<32x2x128xf32, #tpu.memory_space<vmem>>, vector<1x2x128xf32>
    %26 = vector.shape_cast %25 : vector<1x2x128xf32> to vector<2x128xf32>
    %27 = vector.extract_strided_slice %26 {offsets = [0, 0], sizes = [1, 128], strides = [1, 1]} : vector<2x128xf32> to vector<1x128xf32>
    %28 = vector.broadcast %27 : vector<1x128xf32> to vector<8x128xf32>
    %29 = arith.addf %24, %28 : vector<8x128xf32>
    %cst_20 = arith.constant 0.000000e+00 : f32
    %30 = vector.broadcast %cst_20 : f32 to vector<8x128xf32>
    %31 = arith.maximumf %29, %30 : vector<8x128xf32>
    %c0_21 = arith.constant 0 : index
    %c0_22 = arith.constant 0 : index
    %c0_23 = arith.constant 0 : index
    %32 = vector.load %arg6[%c0_21, %c0_22, %c0_23] : memref<4x8x128xf32, #tpu.memory_space<vmem>>, vector<1x8x128xf32>
    %33 = vector.shape_cast %32 : vector<1x8x128xf32> to vector<8x128xf32>
    %34 = arith.mulf %31, %33 : vector<8x128xf32>
    %35 = vector.extract_strided_slice %26 {offsets = [1, 0], sizes = [1, 128], strides = [1, 1]} : vector<2x128xf32> to vector<1x128xf32>
    %36 = vector.broadcast %35 : vector<1x128xf32> to vector<8x128xf32>
    %37 = arith.mulf %34, %36 : vector<8x128xf32>
    %38 = arith.addf %21, %37 : vector<8x128xf32>
    %c2 = arith.constant 2 : index
    %c0_24 = arith.constant 0 : index
    %c0_25 = arith.constant 0 : index
    %39 = vector.load %arg4[%c2, %c0_24, %c0_25] : memref<32x64x128xbf16, #tpu.memory_space<vmem>>, vector<1x64x128xbf16>
    %40 = vector.shape_cast %39 : vector<1x64x128xbf16> to vector<64x128xbf16>
    %cst_26 = arith.constant dense<0.000000e+00> : vector<8x128xf32>
    %41 = tpu.matmul %3, %40, %cst_26 {dimension_numbers = #tpu.dot_dimension_numbers<[1], [0], [0], [1], [0, 0, 1, 1], [], []>} : vector<8x64xbf16>, vector<64x128xbf16>, vector<8x128xf32> -> vector<8x128xf32>
    %c2_27 = arith.constant 2 : index
    %c0_28 = arith.constant 0 : index
    %c0_29 = arith.constant 0 : index
    %42 = vector.load %arg5[%c2_27, %c0_28, %c0_29] : memref<32x2x128xf32, #tpu.memory_space<vmem>>, vector<1x2x128xf32>
    %43 = vector.shape_cast %42 : vector<1x2x128xf32> to vector<2x128xf32>
    %44 = vector.extract_strided_slice %43 {offsets = [0, 0], sizes = [1, 128], strides = [1, 1]} : vector<2x128xf32> to vector<1x128xf32>
    %45 = vector.broadcast %44 : vector<1x128xf32> to vector<8x128xf32>
    %46 = arith.addf %41, %45 : vector<8x128xf32>
    %cst_30 = arith.constant 0.000000e+00 : f32
    %47 = vector.broadcast %cst_30 : f32 to vector<8x128xf32>
    %48 = arith.maximumf %46, %47 : vector<8x128xf32>
    %c0_31 = arith.constant 0 : index
    %c0_32 = arith.constant 0 : index
    %c0_33 = arith.constant 0 : index
    %49 = vector.load %arg6[%c0_31, %c0_32, %c0_33] : memref<4x8x128xf32, #tpu.memory_space<vmem>>, vector<1x8x128xf32>
    %50 = vector.shape_cast %49 : vector<1x8x128xf32> to vector<8x128xf32>
    %51 = arith.mulf %48, %50 : vector<8x128xf32>
    %52 = vector.extract_strided_slice %43 {offsets = [1, 0], sizes = [1, 128], strides = [1, 1]} : vector<2x128xf32> to vector<1x128xf32>
    %53 = vector.broadcast %52 : vector<1x128xf32> to vector<8x128xf32>
    %54 = arith.mulf %51, %53 : vector<8x128xf32>
    %55 = arith.addf %38, %54 : vector<8x128xf32>
    %c3 = arith.constant 3 : index
    %c0_34 = arith.constant 0 : index
    %c0_35 = arith.constant 0 : index
    %56 = vector.load %arg4[%c3, %c0_34, %c0_35] : memref<32x64x128xbf16, #tpu.memory_space<vmem>>, vector<1x64x128xbf16>
    %57 = vector.shape_cast %56 : vector<1x64x128xbf16> to vector<64x128xbf16>
    %cst_36 = arith.constant dense<0.000000e+00> : vector<8x128xf32>
    %58 = tpu.matmul %3, %57, %cst_36 {dimension_numbers = #tpu.dot_dimension_numbers<[1], [0], [0], [1], [0, 0, 1, 1], [], []>} : vector<8x64xbf16>, vector<64x128xbf16>, vector<8x128xf32> -> vector<8x128xf32>
    %c3_37 = arith.constant 3 : index
    %c0_38 = arith.constant 0 : index
    %c0_39 = arith.constant 0 : index
    %59 = vector.load %arg5[%c3_37, %c0_38, %c0_39] : memref<32x2x128xf32, #tpu.memory_space<vmem>>, vector<1x2x128xf32>
    %60 = vector.shape_cast %59 : vector<1x2x128xf32> to vector<2x128xf32>
    %61 = vector.extract_strided_slice %60 {offsets = [0, 0], sizes = [1, 128], strides = [1, 1]} : vector<2x128xf32> to vector<1x128xf32>
    %62 = vector.broadcast %61 : vector<1x128xf32> to vector<8x128xf32>
    %63 = arith.addf %58, %62 : vector<8x128xf32>
    %cst_40 = arith.constant 0.000000e+00 : f32
    %64 = vector.broadcast %cst_40 : f32 to vector<8x128xf32>
    %65 = arith.maximumf %63, %64 : vector<8x128xf32>
    %c0_41 = arith.constant 0 : index
    %c0_42 = arith.constant 0 : index
    %c0_43 = arith.constant 0 : index
    %66 = vector.load %arg6[%c0_41, %c0_42, %c0_43] : memref<4x8x128xf32, #tpu.memory_space<vmem>>, vector<1x8x128xf32>
    %67 = vector.shape_cast %66 : vector<1x8x128xf32> to vector<8x128xf32>
    %68 = arith.mulf %65, %67 : vector<8x128xf32>
    %69 = vector.extract_strided_slice %60 {offsets = [1, 0], sizes = [1, 128], strides = [1, 1]} : vector<2x128xf32> to vector<1x128xf32>
    %70 = vector.broadcast %69 : vector<1x128xf32> to vector<8x128xf32>
    %71 = arith.mulf %68, %70 : vector<8x128xf32>
    %72 = arith.addf %55, %71 : vector<8x128xf32>
    %c4 = arith.constant 4 : index
    %c0_44 = arith.constant 0 : index
    %c0_45 = arith.constant 0 : index
    %73 = vector.load %arg4[%c4, %c0_44, %c0_45] : memref<32x64x128xbf16, #tpu.memory_space<vmem>>, vector<1x64x128xbf16>
    %74 = vector.shape_cast %73 : vector<1x64x128xbf16> to vector<64x128xbf16>
    %cst_46 = arith.constant dense<0.000000e+00> : vector<8x128xf32>
    %75 = tpu.matmul %3, %74, %cst_46 {dimension_numbers = #tpu.dot_dimension_numbers<[1], [0], [0], [1], [0, 0, 1, 1], [], []>} : vector<8x64xbf16>, vector<64x128xbf16>, vector<8x128xf32> -> vector<8x128xf32>
    %c4_47 = arith.constant 4 : index
    %c0_48 = arith.constant 0 : index
    %c0_49 = arith.constant 0 : index
    %76 = vector.load %arg5[%c4_47, %c0_48, %c0_49] : memref<32x2x128xf32, #tpu.memory_space<vmem>>, vector<1x2x128xf32>
    %77 = vector.shape_cast %76 : vector<1x2x128xf32> to vector<2x128xf32>
    %78 = vector.extract_strided_slice %77 {offsets = [0, 0], sizes = [1, 128], strides = [1, 1]} : vector<2x128xf32> to vector<1x128xf32>
    %79 = vector.broadcast %78 : vector<1x128xf32> to vector<8x128xf32>
    %80 = arith.addf %75, %79 : vector<8x128xf32>
    %cst_50 = arith.constant 0.000000e+00 : f32
    %81 = vector.broadcast %cst_50 : f32 to vector<8x128xf32>
    %82 = arith.maximumf %80, %81 : vector<8x128xf32>
    %c0_51 = arith.constant 0 : index
    %c0_52 = arith.constant 0 : index
    %c0_53 = arith.constant 0 : index
    %83 = vector.load %arg6[%c0_51, %c0_52, %c0_53] : memref<4x8x128xf32, #tpu.memory_space<vmem>>, vector<1x8x128xf32>
    %84 = vector.shape_cast %83 : vector<1x8x128xf32> to vector<8x128xf32>
    %85 = arith.mulf %82, %84 : vector<8x128xf32>
    %86 = vector.extract_strided_slice %77 {offsets = [1, 0], sizes = [1, 128], strides = [1, 1]} : vector<2x128xf32> to vector<1x128xf32>
    %87 = vector.broadcast %86 : vector<1x128xf32> to vector<8x128xf32>
    %88 = arith.mulf %85, %87 : vector<8x128xf32>
    %89 = arith.addf %72, %88 : vector<8x128xf32>
    %c5 = arith.constant 5 : index
    %c0_54 = arith.constant 0 : index
    %c0_55 = arith.constant 0 : index
    %90 = vector.load %arg4[%c5, %c0_54, %c0_55] : memref<32x64x128xbf16, #tpu.memory_space<vmem>>, vector<1x64x128xbf16>
    %91 = vector.shape_cast %90 : vector<1x64x128xbf16> to vector<64x128xbf16>
    %cst_56 = arith.constant dense<0.000000e+00> : vector<8x128xf32>
    %92 = tpu.matmul %3, %91, %cst_56 {dimension_numbers = #tpu.dot_dimension_numbers<[1], [0], [0], [1], [0, 0, 1, 1], [], []>} : vector<8x64xbf16>, vector<64x128xbf16>, vector<8x128xf32> -> vector<8x128xf32>
    %c5_57 = arith.constant 5 : index
    %c0_58 = arith.constant 0 : index
    %c0_59 = arith.constant 0 : index
    %93 = vector.load %arg5[%c5_57, %c0_58, %c0_59] : memref<32x2x128xf32, #tpu.memory_space<vmem>>, vector<1x2x128xf32>
    %94 = vector.shape_cast %93 : vector<1x2x128xf32> to vector<2x128xf32>
    %95 = vector.extract_strided_slice %94 {offsets = [0, 0], sizes = [1, 128], strides = [1, 1]} : vector<2x128xf32> to vector<1x128xf32>
    %96 = vector.broadcast %95 : vector<1x128xf32> to vector<8x128xf32>
    %97 = arith.addf %92, %96 : vector<8x128xf32>
    %cst_60 = arith.constant 0.000000e+00 : f32
    %98 = vector.broadcast %cst_60 : f32 to vector<8x128xf32>
    %99 = arith.maximumf %97, %98 : vector<8x128xf32>
    %c0_61 = arith.constant 0 : index
    %c0_62 = arith.constant 0 : index
    %c0_63 = arith.constant 0 : index
    %100 = vector.load %arg6[%c0_61, %c0_62, %c0_63] : memref<4x8x128xf32, #tpu.memory_space<vmem>>, vector<1x8x128xf32>
    %101 = vector.shape_cast %100 : vector<1x8x128xf32> to vector<8x128xf32>
    %102 = arith.mulf %99, %101 : vector<8x128xf32>
    %103 = vector.extract_strided_slice %94 {offsets = [1, 0], sizes = [1, 128], strides = [1, 1]} : vector<2x128xf32> to vector<1x128xf32>
    %104 = vector.broadcast %103 : vector<1x128xf32> to vector<8x128xf32>
    %105 = arith.mulf %102, %104 : vector<8x128xf32>
    %106 = arith.addf %89, %105 : vector<8x128xf32>
    %c6 = arith.constant 6 : index
    %c0_64 = arith.constant 0 : index
    %c0_65 = arith.constant 0 : index
    %107 = vector.load %arg4[%c6, %c0_64, %c0_65] : memref<32x64x128xbf16, #tpu.memory_space<vmem>>, vector<1x64x128xbf16>
    %108 = vector.shape_cast %107 : vector<1x64x128xbf16> to vector<64x128xbf16>
    %cst_66 = arith.constant dense<0.000000e+00> : vector<8x128xf32>
    %109 = tpu.matmul %3, %108, %cst_66 {dimension_numbers = #tpu.dot_dimension_numbers<[1], [0], [0], [1], [0, 0, 1, 1], [], []>} : vector<8x64xbf16>, vector<64x128xbf16>, vector<8x128xf32> -> vector<8x128xf32>
    %c6_67 = arith.constant 6 : index
    %c0_68 = arith.constant 0 : index
    %c0_69 = arith.constant 0 : index
    %110 = vector.load %arg5[%c6_67, %c0_68, %c0_69] : memref<32x2x128xf32, #tpu.memory_space<vmem>>, vector<1x2x128xf32>
    %111 = vector.shape_cast %110 : vector<1x2x128xf32> to vector<2x128xf32>
    %112 = vector.extract_strided_slice %111 {offsets = [0, 0], sizes = [1, 128], strides = [1, 1]} : vector<2x128xf32> to vector<1x128xf32>
    %113 = vector.broadcast %112 : vector<1x128xf32> to vector<8x128xf32>
    %114 = arith.addf %109, %113 : vector<8x128xf32>
    %cst_70 = arith.constant 0.000000e+00 : f32
    %115 = vector.broadcast %cst_70 : f32 to vector<8x128xf32>
    %116 = arith.maximumf %114, %115 : vector<8x128xf32>
    %c0_71 = arith.constant 0 : index
    %c0_72 = arith.constant 0 : index
    %c0_73 = arith.constant 0 : index
    %117 = vector.load %arg6[%c0_71, %c0_72, %c0_73] : memref<4x8x128xf32, #tpu.memory_space<vmem>>, vector<1x8x128xf32>
    %118 = vector.shape_cast %117 : vector<1x8x128xf32> to vector<8x128xf32>
    %119 = arith.mulf %116, %118 : vector<8x128xf32>
    %120 = vector.extract_strided_slice %111 {offsets = [1, 0], sizes = [1, 128], strides = [1, 1]} : vector<2x128xf32> to vector<1x128xf32>
    %121 = vector.broadcast %120 : vector<1x128xf32> to vector<8x128xf32>
    %122 = arith.mulf %119, %121 : vector<8x128xf32>
    %123 = arith.addf %106, %122 : vector<8x128xf32>
    %c7 = arith.constant 7 : index
    %c0_74 = arith.constant 0 : index
    %c0_75 = arith.constant 0 : index
    %124 = vector.load %arg4[%c7, %c0_74, %c0_75] : memref<32x64x128xbf16, #tpu.memory_space<vmem>>, vector<1x64x128xbf16>
    %125 = vector.shape_cast %124 : vector<1x64x128xbf16> to vector<64x128xbf16>
    %cst_76 = arith.constant dense<0.000000e+00> : vector<8x128xf32>
    %126 = tpu.matmul %3, %125, %cst_76 {dimension_numbers = #tpu.dot_dimension_numbers<[1], [0], [0], [1], [0, 0, 1, 1], [], []>} : vector<8x64xbf16>, vector<64x128xbf16>, vector<8x128xf32> -> vector<8x128xf32>
    %c7_77 = arith.constant 7 : index
    %c0_78 = arith.constant 0 : index
    %c0_79 = arith.constant 0 : index
    %127 = vector.load %arg5[%c7_77, %c0_78, %c0_79] : memref<32x2x128xf32, #tpu.memory_space<vmem>>, vector<1x2x128xf32>
    %128 = vector.shape_cast %127 : vector<1x2x128xf32> to vector<2x128xf32>
    %129 = vector.extract_strided_slice %128 {offsets = [0, 0], sizes = [1, 128], strides = [1, 1]} : vector<2x128xf32> to vector<1x128xf32>
    %130 = vector.broadcast %129 : vector<1x128xf32> to vector<8x128xf32>
    %131 = arith.addf %126, %130 : vector<8x128xf32>
    %cst_80 = arith.constant 0.000000e+00 : f32
    %132 = vector.broadcast %cst_80 : f32 to vector<8x128xf32>
    %133 = arith.maximumf %131, %132 : vector<8x128xf32>
    %c0_81 = arith.constant 0 : index
    %c0_82 = arith.constant 0 : index
    %c0_83 = arith.constant 0 : index
    %134 = vector.load %arg6[%c0_81, %c0_82, %c0_83] : memref<4x8x128xf32, #tpu.memory_space<vmem>>, vector<1x8x128xf32>
    %135 = vector.shape_cast %134 : vector<1x8x128xf32> to vector<8x128xf32>
    %136 = arith.mulf %133, %135 : vector<8x128xf32>
    %137 = vector.extract_strided_slice %128 {offsets = [1, 0], sizes = [1, 128], strides = [1, 1]} : vector<2x128xf32> to vector<1x128xf32>
    %138 = vector.broadcast %137 : vector<1x128xf32> to vector<8x128xf32>
    %139 = arith.mulf %136, %138 : vector<8x128xf32>
    %140 = arith.addf %123, %139 : vector<8x128xf32>
    %c8 = arith.constant 8 : index
    %c0_84 = arith.constant 0 : index
    %c0_85 = arith.constant 0 : index
    %141 = vector.load %arg4[%c8, %c0_84, %c0_85] : memref<32x64x128xbf16, #tpu.memory_space<vmem>>, vector<1x64x128xbf16>
    %142 = vector.shape_cast %141 : vector<1x64x128xbf16> to vector<64x128xbf16>
    %cst_86 = arith.constant dense<0.000000e+00> : vector<8x128xf32>
    %143 = tpu.matmul %3, %142, %cst_86 {dimension_numbers = #tpu.dot_dimension_numbers<[1], [0], [0], [1], [0, 0, 1, 1], [], []>} : vector<8x64xbf16>, vector<64x128xbf16>, vector<8x128xf32> -> vector<8x128xf32>
    %c8_87 = arith.constant 8 : index
    %c0_88 = arith.constant 0 : index
    %c0_89 = arith.constant 0 : index
    %144 = vector.load %arg5[%c8_87, %c0_88, %c0_89] : memref<32x2x128xf32, #tpu.memory_space<vmem>>, vector<1x2x128xf32>
    %145 = vector.shape_cast %144 : vector<1x2x128xf32> to vector<2x128xf32>
    %146 = vector.extract_strided_slice %145 {offsets = [0, 0], sizes = [1, 128], strides = [1, 1]} : vector<2x128xf32> to vector<1x128xf32>
    %147 = vector.broadcast %146 : vector<1x128xf32> to vector<8x128xf32>
    %148 = arith.addf %143, %147 : vector<8x128xf32>
    %cst_90 = arith.constant 0.000000e+00 : f32
    %149 = vector.broadcast %cst_90 : f32 to vector<8x128xf32>
    %150 = arith.maximumf %148, %149 : vector<8x128xf32>
    %c1_91 = arith.constant 1 : index
    %c0_92 = arith.constant 0 : index
    %c0_93 = arith.constant 0 : index
    %151 = vector.load %arg6[%c1_91, %c0_92, %c0_93] : memref<4x8x128xf32, #tpu.memory_space<vmem>>, vector<1x8x128xf32>
    %152 = vector.shape_cast %151 : vector<1x8x128xf32> to vector<8x128xf32>
    %153 = arith.mulf %150, %152 : vector<8x128xf32>
    %154 = vector.extract_strided_slice %145 {offsets = [1, 0], sizes = [1, 128], strides = [1, 1]} : vector<2x128xf32> to vector<1x128xf32>
    %155 = vector.broadcast %154 : vector<1x128xf32> to vector<8x128xf32>
    %156 = arith.mulf %153, %155 : vector<8x128xf32>
    %157 = arith.addf %140, %156 : vector<8x128xf32>
    %c9 = arith.constant 9 : index
    %c0_94 = arith.constant 0 : index
    %c0_95 = arith.constant 0 : index
    %158 = vector.load %arg4[%c9, %c0_94, %c0_95] : memref<32x64x128xbf16, #tpu.memory_space<vmem>>, vector<1x64x128xbf16>
    %159 = vector.shape_cast %158 : vector<1x64x128xbf16> to vector<64x128xbf16>
    %cst_96 = arith.constant dense<0.000000e+00> : vector<8x128xf32>
    %160 = tpu.matmul %3, %159, %cst_96 {dimension_numbers = #tpu.dot_dimension_numbers<[1], [0], [0], [1], [0, 0, 1, 1], [], []>} : vector<8x64xbf16>, vector<64x128xbf16>, vector<8x128xf32> -> vector<8x128xf32>
    %c9_97 = arith.constant 9 : index
    %c0_98 = arith.constant 0 : index
    %c0_99 = arith.constant 0 : index
    %161 = vector.load %arg5[%c9_97, %c0_98, %c0_99] : memref<32x2x128xf32, #tpu.memory_space<vmem>>, vector<1x2x128xf32>
    %162 = vector.shape_cast %161 : vector<1x2x128xf32> to vector<2x128xf32>
    %163 = vector.extract_strided_slice %162 {offsets = [0, 0], sizes = [1, 128], strides = [1, 1]} : vector<2x128xf32> to vector<1x128xf32>
    %164 = vector.broadcast %163 : vector<1x128xf32> to vector<8x128xf32>
    %165 = arith.addf %160, %164 : vector<8x128xf32>
    %cst_100 = arith.constant 0.000000e+00 : f32
    %166 = vector.broadcast %cst_100 : f32 to vector<8x128xf32>
    %167 = arith.maximumf %165, %166 : vector<8x128xf32>
    %c1_101 = arith.constant 1 : index
    %c0_102 = arith.constant 0 : index
    %c0_103 = arith.constant 0 : index
    %168 = vector.load %arg6[%c1_101, %c0_102, %c0_103] : memref<4x8x128xf32, #tpu.memory_space<vmem>>, vector<1x8x128xf32>
    %169 = vector.shape_cast %168 : vector<1x8x128xf32> to vector<8x128xf32>
    %170 = arith.mulf %167, %169 : vector<8x128xf32>
    %171 = vector.extract_strided_slice %162 {offsets = [1, 0], sizes = [1, 128], strides = [1, 1]} : vector<2x128xf32> to vector<1x128xf32>
    %172 = vector.broadcast %171 : vector<1x128xf32> to vector<8x128xf32>
    %173 = arith.mulf %170, %172 : vector<8x128xf32>
    %174 = arith.addf %157, %173 : vector<8x128xf32>
    %c10 = arith.constant 10 : index
    %c0_104 = arith.constant 0 : index
    %c0_105 = arith.constant 0 : index
    %175 = vector.load %arg4[%c10, %c0_104, %c0_105] : memref<32x64x128xbf16, #tpu.memory_space<vmem>>, vector<1x64x128xbf16>
    %176 = vector.shape_cast %175 : vector<1x64x128xbf16> to vector<64x128xbf16>
    %cst_106 = arith.constant dense<0.000000e+00> : vector<8x128xf32>
    %177 = tpu.matmul %3, %176, %cst_106 {dimension_numbers = #tpu.dot_dimension_numbers<[1], [0], [0], [1], [0, 0, 1, 1], [], []>} : vector<8x64xbf16>, vector<64x128xbf16>, vector<8x128xf32> -> vector<8x128xf32>
    %c10_107 = arith.constant 10 : index
    %c0_108 = arith.constant 0 : index
    %c0_109 = arith.constant 0 : index
    %178 = vector.load %arg5[%c10_107, %c0_108, %c0_109] : memref<32x2x128xf32, #tpu.memory_space<vmem>>, vector<1x2x128xf32>
    %179 = vector.shape_cast %178 : vector<1x2x128xf32> to vector<2x128xf32>
    %180 = vector.extract_strided_slice %179 {offsets = [0, 0], sizes = [1, 128], strides = [1, 1]} : vector<2x128xf32> to vector<1x128xf32>
    %181 = vector.broadcast %180 : vector<1x128xf32> to vector<8x128xf32>
    %182 = arith.addf %177, %181 : vector<8x128xf32>
    %cst_110 = arith.constant 0.000000e+00 : f32
    %183 = vector.broadcast %cst_110 : f32 to vector<8x128xf32>
    %184 = arith.maximumf %182, %183 : vector<8x128xf32>
    %c1_111 = arith.constant 1 : index
    %c0_112 = arith.constant 0 : index
    %c0_113 = arith.constant 0 : index
    %185 = vector.load %arg6[%c1_111, %c0_112, %c0_113] : memref<4x8x128xf32, #tpu.memory_space<vmem>>, vector<1x8x128xf32>
    %186 = vector.shape_cast %185 : vector<1x8x128xf32> to vector<8x128xf32>
    %187 = arith.mulf %184, %186 : vector<8x128xf32>
    %188 = vector.extract_strided_slice %179 {offsets = [1, 0], sizes = [1, 128], strides = [1, 1]} : vector<2x128xf32> to vector<1x128xf32>
    %189 = vector.broadcast %188 : vector<1x128xf32> to vector<8x128xf32>
    %190 = arith.mulf %187, %189 : vector<8x128xf32>
    %191 = arith.addf %174, %190 : vector<8x128xf32>
    %c11 = arith.constant 11 : index
    %c0_114 = arith.constant 0 : index
    %c0_115 = arith.constant 0 : index
    %192 = vector.load %arg4[%c11, %c0_114, %c0_115] : memref<32x64x128xbf16, #tpu.memory_space<vmem>>, vector<1x64x128xbf16>
    %193 = vector.shape_cast %192 : vector<1x64x128xbf16> to vector<64x128xbf16>
    %cst_116 = arith.constant dense<0.000000e+00> : vector<8x128xf32>
    %194 = tpu.matmul %3, %193, %cst_116 {dimension_numbers = #tpu.dot_dimension_numbers<[1], [0], [0], [1], [0, 0, 1, 1], [], []>} : vector<8x64xbf16>, vector<64x128xbf16>, vector<8x128xf32> -> vector<8x128xf32>
    %c11_117 = arith.constant 11 : index
    %c0_118 = arith.constant 0 : index
    %c0_119 = arith.constant 0 : index
    %195 = vector.load %arg5[%c11_117, %c0_118, %c0_119] : memref<32x2x128xf32, #tpu.memory_space<vmem>>, vector<1x2x128xf32>
    %196 = vector.shape_cast %195 : vector<1x2x128xf32> to vector<2x128xf32>
    %197 = vector.extract_strided_slice %196 {offsets = [0, 0], sizes = [1, 128], strides = [1, 1]} : vector<2x128xf32> to vector<1x128xf32>
    %198 = vector.broadcast %197 : vector<1x128xf32> to vector<8x128xf32>
    %199 = arith.addf %194, %198 : vector<8x128xf32>
    %cst_120 = arith.constant 0.000000e+00 : f32
    %200 = vector.broadcast %cst_120 : f32 to vector<8x128xf32>
    %201 = arith.maximumf %199, %200 : vector<8x128xf32>
    %c1_121 = arith.constant 1 : index
    %c0_122 = arith.constant 0 : index
    %c0_123 = arith.constant 0 : index
    %202 = vector.load %arg6[%c1_121, %c0_122, %c0_123] : memref<4x8x128xf32, #tpu.memory_space<vmem>>, vector<1x8x128xf32>
    %203 = vector.shape_cast %202 : vector<1x8x128xf32> to vector<8x128xf32>
    %204 = arith.mulf %201, %203 : vector<8x128xf32>
    %205 = vector.extract_strided_slice %196 {offsets = [1, 0], sizes = [1, 128], strides = [1, 1]} : vector<2x128xf32> to vector<1x128xf32>
    %206 = vector.broadcast %205 : vector<1x128xf32> to vector<8x128xf32>
    %207 = arith.mulf %204, %206 : vector<8x128xf32>
    %208 = arith.addf %191, %207 : vector<8x128xf32>
    %c12 = arith.constant 12 : index
    %c0_124 = arith.constant 0 : index
    %c0_125 = arith.constant 0 : index
    %209 = vector.load %arg4[%c12, %c0_124, %c0_125] : memref<32x64x128xbf16, #tpu.memory_space<vmem>>, vector<1x64x128xbf16>
    %210 = vector.shape_cast %209 : vector<1x64x128xbf16> to vector<64x128xbf16>
    %cst_126 = arith.constant dense<0.000000e+00> : vector<8x128xf32>
    %211 = tpu.matmul %3, %210, %cst_126 {dimension_numbers = #tpu.dot_dimension_numbers<[1], [0], [0], [1], [0, 0, 1, 1], [], []>} : vector<8x64xbf16>, vector<64x128xbf16>, vector<8x128xf32> -> vector<8x128xf32>
    %c12_127 = arith.constant 12 : index
    %c0_128 = arith.constant 0 : index
    %c0_129 = arith.constant 0 : index
    %212 = vector.load %arg5[%c12_127, %c0_128, %c0_129] : memref<32x2x128xf32, #tpu.memory_space<vmem>>, vector<1x2x128xf32>
    %213 = vector.shape_cast %212 : vector<1x2x128xf32> to vector<2x128xf32>
    %214 = vector.extract_strided_slice %213 {offsets = [0, 0], sizes = [1, 128], strides = [1, 1]} : vector<2x128xf32> to vector<1x128xf32>
    %215 = vector.broadcast %214 : vector<1x128xf32> to vector<8x128xf32>
    %216 = arith.addf %211, %215 : vector<8x128xf32>
    %cst_130 = arith.constant 0.000000e+00 : f32
    %217 = vector.broadcast %cst_130 : f32 to vector<8x128xf32>
    %218 = arith.maximumf %216, %217 : vector<8x128xf32>
    %c1_131 = arith.constant 1 : index
    %c0_132 = arith.constant 0 : index
    %c0_133 = arith.constant 0 : index
    %219 = vector.load %arg6[%c1_131, %c0_132, %c0_133] : memref<4x8x128xf32, #tpu.memory_space<vmem>>, vector<1x8x128xf32>
    %220 = vector.shape_cast %219 : vector<1x8x128xf32> to vector<8x128xf32>
    %221 = arith.mulf %218, %220 : vector<8x128xf32>
    %222 = vector.extract_strided_slice %213 {offsets = [1, 0], sizes = [1, 128], strides = [1, 1]} : vector<2x128xf32> to vector<1x128xf32>
    %223 = vector.broadcast %222 : vector<1x128xf32> to vector<8x128xf32>
    %224 = arith.mulf %221, %223 : vector<8x128xf32>
    %225 = arith.addf %208, %224 : vector<8x128xf32>
    %c13 = arith.constant 13 : index
    %c0_134 = arith.constant 0 : index
    %c0_135 = arith.constant 0 : index
    %226 = vector.load %arg4[%c13, %c0_134, %c0_135] : memref<32x64x128xbf16, #tpu.memory_space<vmem>>, vector<1x64x128xbf16>
    %227 = vector.shape_cast %226 : vector<1x64x128xbf16> to vector<64x128xbf16>
    %cst_136 = arith.constant dense<0.000000e+00> : vector<8x128xf32>
    %228 = tpu.matmul %3, %227, %cst_136 {dimension_numbers = #tpu.dot_dimension_numbers<[1], [0], [0], [1], [0, 0, 1, 1], [], []>} : vector<8x64xbf16>, vector<64x128xbf16>, vector<8x128xf32> -> vector<8x128xf32>
    %c13_137 = arith.constant 13 : index
    %c0_138 = arith.constant 0 : index
    %c0_139 = arith.constant 0 : index
    %229 = vector.load %arg5[%c13_137, %c0_138, %c0_139] : memref<32x2x128xf32, #tpu.memory_space<vmem>>, vector<1x2x128xf32>
    %230 = vector.shape_cast %229 : vector<1x2x128xf32> to vector<2x128xf32>
    %231 = vector.extract_strided_slice %230 {offsets = [0, 0], sizes = [1, 128], strides = [1, 1]} : vector<2x128xf32> to vector<1x128xf32>
    %232 = vector.broadcast %231 : vector<1x128xf32> to vector<8x128xf32>
    %233 = arith.addf %228, %232 : vector<8x128xf32>
    %cst_140 = arith.constant 0.000000e+00 : f32
    %234 = vector.broadcast %cst_140 : f32 to vector<8x128xf32>
    %235 = arith.maximumf %233, %234 : vector<8x128xf32>
    %c1_141 = arith.constant 1 : index
    %c0_142 = arith.constant 0 : index
    %c0_143 = arith.constant 0 : index
    %236 = vector.load %arg6[%c1_141, %c0_142, %c0_143] : memref<4x8x128xf32, #tpu.memory_space<vmem>>, vector<1x8x128xf32>
    %237 = vector.shape_cast %236 : vector<1x8x128xf32> to vector<8x128xf32>
    %238 = arith.mulf %235, %237 : vector<8x128xf32>
    %239 = vector.extract_strided_slice %230 {offsets = [1, 0], sizes = [1, 128], strides = [1, 1]} : vector<2x128xf32> to vector<1x128xf32>
    %240 = vector.broadcast %239 : vector<1x128xf32> to vector<8x128xf32>
    %241 = arith.mulf %238, %240 : vector<8x128xf32>
    %242 = arith.addf %225, %241 : vector<8x128xf32>
    %c14 = arith.constant 14 : index
    %c0_144 = arith.constant 0 : index
    %c0_145 = arith.constant 0 : index
    %243 = vector.load %arg4[%c14, %c0_144, %c0_145] : memref<32x64x128xbf16, #tpu.memory_space<vmem>>, vector<1x64x128xbf16>
    %244 = vector.shape_cast %243 : vector<1x64x128xbf16> to vector<64x128xbf16>
    %cst_146 = arith.constant dense<0.000000e+00> : vector<8x128xf32>
    %245 = tpu.matmul %3, %244, %cst_146 {dimension_numbers = #tpu.dot_dimension_numbers<[1], [0], [0], [1], [0, 0, 1, 1], [], []>} : vector<8x64xbf16>, vector<64x128xbf16>, vector<8x128xf32> -> vector<8x128xf32>
    %c14_147 = arith.constant 14 : index
    %c0_148 = arith.constant 0 : index
    %c0_149 = arith.constant 0 : index
    %246 = vector.load %arg5[%c14_147, %c0_148, %c0_149] : memref<32x2x128xf32, #tpu.memory_space<vmem>>, vector<1x2x128xf32>
    %247 = vector.shape_cast %246 : vector<1x2x128xf32> to vector<2x128xf32>
    %248 = vector.extract_strided_slice %247 {offsets = [0, 0], sizes = [1, 128], strides = [1, 1]} : vector<2x128xf32> to vector<1x128xf32>
    %249 = vector.broadcast %248 : vector<1x128xf32> to vector<8x128xf32>
    %250 = arith.addf %245, %249 : vector<8x128xf32>
    %cst_150 = arith.constant 0.000000e+00 : f32
    %251 = vector.broadcast %cst_150 : f32 to vector<8x128xf32>
    %252 = arith.maximumf %250, %251 : vector<8x128xf32>
    %c1_151 = arith.constant 1 : index
    %c0_152 = arith.constant 0 : index
    %c0_153 = arith.constant 0 : index
    %253 = vector.load %arg6[%c1_151, %c0_152, %c0_153] : memref<4x8x128xf32, #tpu.memory_space<vmem>>, vector<1x8x128xf32>
    %254 = vector.shape_cast %253 : vector<1x8x128xf32> to vector<8x128xf32>
    %255 = arith.mulf %252, %254 : vector<8x128xf32>
    %256 = vector.extract_strided_slice %247 {offsets = [1, 0], sizes = [1, 128], strides = [1, 1]} : vector<2x128xf32> to vector<1x128xf32>
    %257 = vector.broadcast %256 : vector<1x128xf32> to vector<8x128xf32>
    %258 = arith.mulf %255, %257 : vector<8x128xf32>
    %259 = arith.addf %242, %258 : vector<8x128xf32>
    %c15 = arith.constant 15 : index
    %c0_154 = arith.constant 0 : index
    %c0_155 = arith.constant 0 : index
    %260 = vector.load %arg4[%c15, %c0_154, %c0_155] : memref<32x64x128xbf16, #tpu.memory_space<vmem>>, vector<1x64x128xbf16>
    %261 = vector.shape_cast %260 : vector<1x64x128xbf16> to vector<64x128xbf16>
    %cst_156 = arith.constant dense<0.000000e+00> : vector<8x128xf32>
    %262 = tpu.matmul %3, %261, %cst_156 {dimension_numbers = #tpu.dot_dimension_numbers<[1], [0], [0], [1], [0, 0, 1, 1], [], []>} : vector<8x64xbf16>, vector<64x128xbf16>, vector<8x128xf32> -> vector<8x128xf32>
    %c15_157 = arith.constant 15 : index
    %c0_158 = arith.constant 0 : index
    %c0_159 = arith.constant 0 : index
    %263 = vector.load %arg5[%c15_157, %c0_158, %c0_159] : memref<32x2x128xf32, #tpu.memory_space<vmem>>, vector<1x2x128xf32>
    %264 = vector.shape_cast %263 : vector<1x2x128xf32> to vector<2x128xf32>
    %265 = vector.extract_strided_slice %264 {offsets = [0, 0], sizes = [1, 128], strides = [1, 1]} : vector<2x128xf32> to vector<1x128xf32>
    %266 = vector.broadcast %265 : vector<1x128xf32> to vector<8x128xf32>
    %267 = arith.addf %262, %266 : vector<8x128xf32>
    %cst_160 = arith.constant 0.000000e+00 : f32
    %268 = vector.broadcast %cst_160 : f32 to vector<8x128xf32>
    %269 = arith.maximumf %267, %268 : vector<8x128xf32>
    %c1_161 = arith.constant 1 : index
    %c0_162 = arith.constant 0 : index
    %c0_163 = arith.constant 0 : index
    %270 = vector.load %arg6[%c1_161, %c0_162, %c0_163] : memref<4x8x128xf32, #tpu.memory_space<vmem>>, vector<1x8x128xf32>
    %271 = vector.shape_cast %270 : vector<1x8x128xf32> to vector<8x128xf32>
    %272 = arith.mulf %269, %271 : vector<8x128xf32>
    %273 = vector.extract_strided_slice %264 {offsets = [1, 0], sizes = [1, 128], strides = [1, 1]} : vector<2x128xf32> to vector<1x128xf32>
    %274 = vector.broadcast %273 : vector<1x128xf32> to vector<8x128xf32>
    %275 = arith.mulf %272, %274 : vector<8x128xf32>
    %276 = arith.addf %259, %275 : vector<8x128xf32>
    %c16 = arith.constant 16 : index
    %c0_164 = arith.constant 0 : index
    %c0_165 = arith.constant 0 : index
    %277 = vector.load %arg4[%c16, %c0_164, %c0_165] : memref<32x64x128xbf16, #tpu.memory_space<vmem>>, vector<1x64x128xbf16>
    %278 = vector.shape_cast %277 : vector<1x64x128xbf16> to vector<64x128xbf16>
    %cst_166 = arith.constant dense<0.000000e+00> : vector<8x128xf32>
    %279 = tpu.matmul %3, %278, %cst_166 {dimension_numbers = #tpu.dot_dimension_numbers<[1], [0], [0], [1], [0, 0, 1, 1], [], []>} : vector<8x64xbf16>, vector<64x128xbf16>, vector<8x128xf32> -> vector<8x128xf32>
    %c16_167 = arith.constant 16 : index
    %c0_168 = arith.constant 0 : index
    %c0_169 = arith.constant 0 : index
    %280 = vector.load %arg5[%c16_167, %c0_168, %c0_169] : memref<32x2x128xf32, #tpu.memory_space<vmem>>, vector<1x2x128xf32>
    %281 = vector.shape_cast %280 : vector<1x2x128xf32> to vector<2x128xf32>
    %282 = vector.extract_strided_slice %281 {offsets = [0, 0], sizes = [1, 128], strides = [1, 1]} : vector<2x128xf32> to vector<1x128xf32>
    %283 = vector.broadcast %282 : vector<1x128xf32> to vector<8x128xf32>
    %284 = arith.addf %279, %283 : vector<8x128xf32>
    %cst_170 = arith.constant 0.000000e+00 : f32
    %285 = vector.broadcast %cst_170 : f32 to vector<8x128xf32>
    %286 = arith.maximumf %284, %285 : vector<8x128xf32>
    %c2_171 = arith.constant 2 : index
    %c0_172 = arith.constant 0 : index
    %c0_173 = arith.constant 0 : index
    %287 = vector.load %arg6[%c2_171, %c0_172, %c0_173] : memref<4x8x128xf32, #tpu.memory_space<vmem>>, vector<1x8x128xf32>
    %288 = vector.shape_cast %287 : vector<1x8x128xf32> to vector<8x128xf32>
    %289 = arith.mulf %286, %288 : vector<8x128xf32>
    %290 = vector.extract_strided_slice %281 {offsets = [1, 0], sizes = [1, 128], strides = [1, 1]} : vector<2x128xf32> to vector<1x128xf32>
    %291 = vector.broadcast %290 : vector<1x128xf32> to vector<8x128xf32>
    %292 = arith.mulf %289, %291 : vector<8x128xf32>
    %293 = arith.addf %276, %292 : vector<8x128xf32>
    %c17 = arith.constant 17 : index
    %c0_174 = arith.constant 0 : index
    %c0_175 = arith.constant 0 : index
    %294 = vector.load %arg4[%c17, %c0_174, %c0_175] : memref<32x64x128xbf16, #tpu.memory_space<vmem>>, vector<1x64x128xbf16>
    %295 = vector.shape_cast %294 : vector<1x64x128xbf16> to vector<64x128xbf16>
    %cst_176 = arith.constant dense<0.000000e+00> : vector<8x128xf32>
    %296 = tpu.matmul %3, %295, %cst_176 {dimension_numbers = #tpu.dot_dimension_numbers<[1], [0], [0], [1], [0, 0, 1, 1], [], []>} : vector<8x64xbf16>, vector<64x128xbf16>, vector<8x128xf32> -> vector<8x128xf32>
    %c17_177 = arith.constant 17 : index
    %c0_178 = arith.constant 0 : index
    %c0_179 = arith.constant 0 : index
    %297 = vector.load %arg5[%c17_177, %c0_178, %c0_179] : memref<32x2x128xf32, #tpu.memory_space<vmem>>, vector<1x2x128xf32>
    %298 = vector.shape_cast %297 : vector<1x2x128xf32> to vector<2x128xf32>
    %299 = vector.extract_strided_slice %298 {offsets = [0, 0], sizes = [1, 128], strides = [1, 1]} : vector<2x128xf32> to vector<1x128xf32>
    %300 = vector.broadcast %299 : vector<1x128xf32> to vector<8x128xf32>
    %301 = arith.addf %296, %300 : vector<8x128xf32>
    %cst_180 = arith.constant 0.000000e+00 : f32
    %302 = vector.broadcast %cst_180 : f32 to vector<8x128xf32>
    %303 = arith.maximumf %301, %302 : vector<8x128xf32>
    %c2_181 = arith.constant 2 : index
    %c0_182 = arith.constant 0 : index
    %c0_183 = arith.constant 0 : index
    %304 = vector.load %arg6[%c2_181, %c0_182, %c0_183] : memref<4x8x128xf32, #tpu.memory_space<vmem>>, vector<1x8x128xf32>
    %305 = vector.shape_cast %304 : vector<1x8x128xf32> to vector<8x128xf32>
    %306 = arith.mulf %303, %305 : vector<8x128xf32>
    %307 = vector.extract_strided_slice %298 {offsets = [1, 0], sizes = [1, 128], strides = [1, 1]} : vector<2x128xf32> to vector<1x128xf32>
    %308 = vector.broadcast %307 : vector<1x128xf32> to vector<8x128xf32>
    %309 = arith.mulf %306, %308 : vector<8x128xf32>
    %310 = arith.addf %293, %309 : vector<8x128xf32>
    %c18 = arith.constant 18 : index
    %c0_184 = arith.constant 0 : index
    %c0_185 = arith.constant 0 : index
    %311 = vector.load %arg4[%c18, %c0_184, %c0_185] : memref<32x64x128xbf16, #tpu.memory_space<vmem>>, vector<1x64x128xbf16>
    %312 = vector.shape_cast %311 : vector<1x64x128xbf16> to vector<64x128xbf16>
    %cst_186 = arith.constant dense<0.000000e+00> : vector<8x128xf32>
    %313 = tpu.matmul %3, %312, %cst_186 {dimension_numbers = #tpu.dot_dimension_numbers<[1], [0], [0], [1], [0, 0, 1, 1], [], []>} : vector<8x64xbf16>, vector<64x128xbf16>, vector<8x128xf32> -> vector<8x128xf32>
    %c18_187 = arith.constant 18 : index
    %c0_188 = arith.constant 0 : index
    %c0_189 = arith.constant 0 : index
    %314 = vector.load %arg5[%c18_187, %c0_188, %c0_189] : memref<32x2x128xf32, #tpu.memory_space<vmem>>, vector<1x2x128xf32>
    %315 = vector.shape_cast %314 : vector<1x2x128xf32> to vector<2x128xf32>
    %316 = vector.extract_strided_slice %315 {offsets = [0, 0], sizes = [1, 128], strides = [1, 1]} : vector<2x128xf32> to vector<1x128xf32>
    %317 = vector.broadcast %316 : vector<1x128xf32> to vector<8x128xf32>
    %318 = arith.addf %313, %317 : vector<8x128xf32>
    %cst_190 = arith.constant 0.000000e+00 : f32
    %319 = vector.broadcast %cst_190 : f32 to vector<8x128xf32>
    %320 = arith.maximumf %318, %319 : vector<8x128xf32>
    %c2_191 = arith.constant 2 : index
    %c0_192 = arith.constant 0 : index
    %c0_193 = arith.constant 0 : index
    %321 = vector.load %arg6[%c2_191, %c0_192, %c0_193] : memref<4x8x128xf32, #tpu.memory_space<vmem>>, vector<1x8x128xf32>
    %322 = vector.shape_cast %321 : vector<1x8x128xf32> to vector<8x128xf32>
    %323 = arith.mulf %320, %322 : vector<8x128xf32>
    %324 = vector.extract_strided_slice %315 {offsets = [1, 0], sizes = [1, 128], strides = [1, 1]} : vector<2x128xf32> to vector<1x128xf32>
    %325 = vector.broadcast %324 : vector<1x128xf32> to vector<8x128xf32>
    %326 = arith.mulf %323, %325 : vector<8x128xf32>
    %327 = arith.addf %310, %326 : vector<8x128xf32>
    %c19 = arith.constant 19 : index
    %c0_194 = arith.constant 0 : index
    %c0_195 = arith.constant 0 : index
    %328 = vector.load %arg4[%c19, %c0_194, %c0_195] : memref<32x64x128xbf16, #tpu.memory_space<vmem>>, vector<1x64x128xbf16>
    %329 = vector.shape_cast %328 : vector<1x64x128xbf16> to vector<64x128xbf16>
    %cst_196 = arith.constant dense<0.000000e+00> : vector<8x128xf32>
    %330 = tpu.matmul %3, %329, %cst_196 {dimension_numbers = #tpu.dot_dimension_numbers<[1], [0], [0], [1], [0, 0, 1, 1], [], []>} : vector<8x64xbf16>, vector<64x128xbf16>, vector<8x128xf32> -> vector<8x128xf32>
    %c19_197 = arith.constant 19 : index
    %c0_198 = arith.constant 0 : index
    %c0_199 = arith.constant 0 : index
    %331 = vector.load %arg5[%c19_197, %c0_198, %c0_199] : memref<32x2x128xf32, #tpu.memory_space<vmem>>, vector<1x2x128xf32>
    %332 = vector.shape_cast %331 : vector<1x2x128xf32> to vector<2x128xf32>
    %333 = vector.extract_strided_slice %332 {offsets = [0, 0], sizes = [1, 128], strides = [1, 1]} : vector<2x128xf32> to vector<1x128xf32>
    %334 = vector.broadcast %333 : vector<1x128xf32> to vector<8x128xf32>
    %335 = arith.addf %330, %334 : vector<8x128xf32>
    %cst_200 = arith.constant 0.000000e+00 : f32
    %336 = vector.broadcast %cst_200 : f32 to vector<8x128xf32>
    %337 = arith.maximumf %335, %336 : vector<8x128xf32>
    %c2_201 = arith.constant 2 : index
    %c0_202 = arith.constant 0 : index
    %c0_203 = arith.constant 0 : index
    %338 = vector.load %arg6[%c2_201, %c0_202, %c0_203] : memref<4x8x128xf32, #tpu.memory_space<vmem>>, vector<1x8x128xf32>
    %339 = vector.shape_cast %338 : vector<1x8x128xf32> to vector<8x128xf32>
    %340 = arith.mulf %337, %339 : vector<8x128xf32>
    %341 = vector.extract_strided_slice %332 {offsets = [1, 0], sizes = [1, 128], strides = [1, 1]} : vector<2x128xf32> to vector<1x128xf32>
    %342 = vector.broadcast %341 : vector<1x128xf32> to vector<8x128xf32>
    %343 = arith.mulf %340, %342 : vector<8x128xf32>
    %344 = arith.addf %327, %343 : vector<8x128xf32>
    %c20 = arith.constant 20 : index
    %c0_204 = arith.constant 0 : index
    %c0_205 = arith.constant 0 : index
    %345 = vector.load %arg4[%c20, %c0_204, %c0_205] : memref<32x64x128xbf16, #tpu.memory_space<vmem>>, vector<1x64x128xbf16>
    %346 = vector.shape_cast %345 : vector<1x64x128xbf16> to vector<64x128xbf16>
    %cst_206 = arith.constant dense<0.000000e+00> : vector<8x128xf32>
    %347 = tpu.matmul %3, %346, %cst_206 {dimension_numbers = #tpu.dot_dimension_numbers<[1], [0], [0], [1], [0, 0, 1, 1], [], []>} : vector<8x64xbf16>, vector<64x128xbf16>, vector<8x128xf32> -> vector<8x128xf32>
    %c20_207 = arith.constant 20 : index
    %c0_208 = arith.constant 0 : index
    %c0_209 = arith.constant 0 : index
    %348 = vector.load %arg5[%c20_207, %c0_208, %c0_209] : memref<32x2x128xf32, #tpu.memory_space<vmem>>, vector<1x2x128xf32>
    %349 = vector.shape_cast %348 : vector<1x2x128xf32> to vector<2x128xf32>
    %350 = vector.extract_strided_slice %349 {offsets = [0, 0], sizes = [1, 128], strides = [1, 1]} : vector<2x128xf32> to vector<1x128xf32>
    %351 = vector.broadcast %350 : vector<1x128xf32> to vector<8x128xf32>
    %352 = arith.addf %347, %351 : vector<8x128xf32>
    %cst_210 = arith.constant 0.000000e+00 : f32
    %353 = vector.broadcast %cst_210 : f32 to vector<8x128xf32>
    %354 = arith.maximumf %352, %353 : vector<8x128xf32>
    %c2_211 = arith.constant 2 : index
    %c0_212 = arith.constant 0 : index
    %c0_213 = arith.constant 0 : index
    %355 = vector.load %arg6[%c2_211, %c0_212, %c0_213] : memref<4x8x128xf32, #tpu.memory_space<vmem>>, vector<1x8x128xf32>
    %356 = vector.shape_cast %355 : vector<1x8x128xf32> to vector<8x128xf32>
    %357 = arith.mulf %354, %356 : vector<8x128xf32>
    %358 = vector.extract_strided_slice %349 {offsets = [1, 0], sizes = [1, 128], strides = [1, 1]} : vector<2x128xf32> to vector<1x128xf32>
    %359 = vector.broadcast %358 : vector<1x128xf32> to vector<8x128xf32>
    %360 = arith.mulf %357, %359 : vector<8x128xf32>
    %361 = arith.addf %344, %360 : vector<8x128xf32>
    %c21 = arith.constant 21 : index
    %c0_214 = arith.constant 0 : index
    %c0_215 = arith.constant 0 : index
    %362 = vector.load %arg4[%c21, %c0_214, %c0_215] : memref<32x64x128xbf16, #tpu.memory_space<vmem>>, vector<1x64x128xbf16>
    %363 = vector.shape_cast %362 : vector<1x64x128xbf16> to vector<64x128xbf16>
    %cst_216 = arith.constant dense<0.000000e+00> : vector<8x128xf32>
    %364 = tpu.matmul %3, %363, %cst_216 {dimension_numbers = #tpu.dot_dimension_numbers<[1], [0], [0], [1], [0, 0, 1, 1], [], []>} : vector<8x64xbf16>, vector<64x128xbf16>, vector<8x128xf32> -> vector<8x128xf32>
    %c21_217 = arith.constant 21 : index
    %c0_218 = arith.constant 0 : index
    %c0_219 = arith.constant 0 : index
    %365 = vector.load %arg5[%c21_217, %c0_218, %c0_219] : memref<32x2x128xf32, #tpu.memory_space<vmem>>, vector<1x2x128xf32>
    %366 = vector.shape_cast %365 : vector<1x2x128xf32> to vector<2x128xf32>
    %367 = vector.extract_strided_slice %366 {offsets = [0, 0], sizes = [1, 128], strides = [1, 1]} : vector<2x128xf32> to vector<1x128xf32>
    %368 = vector.broadcast %367 : vector<1x128xf32> to vector<8x128xf32>
    %369 = arith.addf %364, %368 : vector<8x128xf32>
    %cst_220 = arith.constant 0.000000e+00 : f32
    %370 = vector.broadcast %cst_220 : f32 to vector<8x128xf32>
    %371 = arith.maximumf %369, %370 : vector<8x128xf32>
    %c2_221 = arith.constant 2 : index
    %c0_222 = arith.constant 0 : index
    %c0_223 = arith.constant 0 : index
    %372 = vector.load %arg6[%c2_221, %c0_222, %c0_223] : memref<4x8x128xf32, #tpu.memory_space<vmem>>, vector<1x8x128xf32>
    %373 = vector.shape_cast %372 : vector<1x8x128xf32> to vector<8x128xf32>
    %374 = arith.mulf %371, %373 : vector<8x128xf32>
    %375 = vector.extract_strided_slice %366 {offsets = [1, 0], sizes = [1, 128], strides = [1, 1]} : vector<2x128xf32> to vector<1x128xf32>
    %376 = vector.broadcast %375 : vector<1x128xf32> to vector<8x128xf32>
    %377 = arith.mulf %374, %376 : vector<8x128xf32>
    %378 = arith.addf %361, %377 : vector<8x128xf32>
    %c22 = arith.constant 22 : index
    %c0_224 = arith.constant 0 : index
    %c0_225 = arith.constant 0 : index
    %379 = vector.load %arg4[%c22, %c0_224, %c0_225] : memref<32x64x128xbf16, #tpu.memory_space<vmem>>, vector<1x64x128xbf16>
    %380 = vector.shape_cast %379 : vector<1x64x128xbf16> to vector<64x128xbf16>
    %cst_226 = arith.constant dense<0.000000e+00> : vector<8x128xf32>
    %381 = tpu.matmul %3, %380, %cst_226 {dimension_numbers = #tpu.dot_dimension_numbers<[1], [0], [0], [1], [0, 0, 1, 1], [], []>} : vector<8x64xbf16>, vector<64x128xbf16>, vector<8x128xf32> -> vector<8x128xf32>
    %c22_227 = arith.constant 22 : index
    %c0_228 = arith.constant 0 : index
    %c0_229 = arith.constant 0 : index
    %382 = vector.load %arg5[%c22_227, %c0_228, %c0_229] : memref<32x2x128xf32, #tpu.memory_space<vmem>>, vector<1x2x128xf32>
    %383 = vector.shape_cast %382 : vector<1x2x128xf32> to vector<2x128xf32>
    %384 = vector.extract_strided_slice %383 {offsets = [0, 0], sizes = [1, 128], strides = [1, 1]} : vector<2x128xf32> to vector<1x128xf32>
    %385 = vector.broadcast %384 : vector<1x128xf32> to vector<8x128xf32>
    %386 = arith.addf %381, %385 : vector<8x128xf32>
    %cst_230 = arith.constant 0.000000e+00 : f32
    %387 = vector.broadcast %cst_230 : f32 to vector<8x128xf32>
    %388 = arith.maximumf %386, %387 : vector<8x128xf32>
    %c2_231 = arith.constant 2 : index
    %c0_232 = arith.constant 0 : index
    %c0_233 = arith.constant 0 : index
    %389 = vector.load %arg6[%c2_231, %c0_232, %c0_233] : memref<4x8x128xf32, #tpu.memory_space<vmem>>, vector<1x8x128xf32>
    %390 = vector.shape_cast %389 : vector<1x8x128xf32> to vector<8x128xf32>
    %391 = arith.mulf %388, %390 : vector<8x128xf32>
    %392 = vector.extract_strided_slice %383 {offsets = [1, 0], sizes = [1, 128], strides = [1, 1]} : vector<2x128xf32> to vector<1x128xf32>
    %393 = vector.broadcast %392 : vector<1x128xf32> to vector<8x128xf32>
    %394 = arith.mulf %391, %393 : vector<8x128xf32>
    %395 = arith.addf %378, %394 : vector<8x128xf32>
    %c23 = arith.constant 23 : index
    %c0_234 = arith.constant 0 : index
    %c0_235 = arith.constant 0 : index
    %396 = vector.load %arg4[%c23, %c0_234, %c0_235] : memref<32x64x128xbf16, #tpu.memory_space<vmem>>, vector<1x64x128xbf16>
    %397 = vector.shape_cast %396 : vector<1x64x128xbf16> to vector<64x128xbf16>
    %cst_236 = arith.constant dense<0.000000e+00> : vector<8x128xf32>
    %398 = tpu.matmul %3, %397, %cst_236 {dimension_numbers = #tpu.dot_dimension_numbers<[1], [0], [0], [1], [0, 0, 1, 1], [], []>} : vector<8x64xbf16>, vector<64x128xbf16>, vector<8x128xf32> -> vector<8x128xf32>
    %c23_237 = arith.constant 23 : index
    %c0_238 = arith.constant 0 : index
    %c0_239 = arith.constant 0 : index
    %399 = vector.load %arg5[%c23_237, %c0_238, %c0_239] : memref<32x2x128xf32, #tpu.memory_space<vmem>>, vector<1x2x128xf32>
    %400 = vector.shape_cast %399 : vector<1x2x128xf32> to vector<2x128xf32>
    %401 = vector.extract_strided_slice %400 {offsets = [0, 0], sizes = [1, 128], strides = [1, 1]} : vector<2x128xf32> to vector<1x128xf32>
    %402 = vector.broadcast %401 : vector<1x128xf32> to vector<8x128xf32>
    %403 = arith.addf %398, %402 : vector<8x128xf32>
    %cst_240 = arith.constant 0.000000e+00 : f32
    %404 = vector.broadcast %cst_240 : f32 to vector<8x128xf32>
    %405 = arith.maximumf %403, %404 : vector<8x128xf32>
    %c2_241 = arith.constant 2 : index
    %c0_242 = arith.constant 0 : index
    %c0_243 = arith.constant 0 : index
    %406 = vector.load %arg6[%c2_241, %c0_242, %c0_243] : memref<4x8x128xf32, #tpu.memory_space<vmem>>, vector<1x8x128xf32>
    %407 = vector.shape_cast %406 : vector<1x8x128xf32> to vector<8x128xf32>
    %408 = arith.mulf %405, %407 : vector<8x128xf32>
    %409 = vector.extract_strided_slice %400 {offsets = [1, 0], sizes = [1, 128], strides = [1, 1]} : vector<2x128xf32> to vector<1x128xf32>
    %410 = vector.broadcast %409 : vector<1x128xf32> to vector<8x128xf32>
    %411 = arith.mulf %408, %410 : vector<8x128xf32>
    %412 = arith.addf %395, %411 : vector<8x128xf32>
    %c24 = arith.constant 24 : index
    %c0_244 = arith.constant 0 : index
    %c0_245 = arith.constant 0 : index
    %413 = vector.load %arg4[%c24, %c0_244, %c0_245] : memref<32x64x128xbf16, #tpu.memory_space<vmem>>, vector<1x64x128xbf16>
    %414 = vector.shape_cast %413 : vector<1x64x128xbf16> to vector<64x128xbf16>
    %cst_246 = arith.constant dense<0.000000e+00> : vector<8x128xf32>
    %415 = tpu.matmul %3, %414, %cst_246 {dimension_numbers = #tpu.dot_dimension_numbers<[1], [0], [0], [1], [0, 0, 1, 1], [], []>} : vector<8x64xbf16>, vector<64x128xbf16>, vector<8x128xf32> -> vector<8x128xf32>
    %c24_247 = arith.constant 24 : index
    %c0_248 = arith.constant 0 : index
    %c0_249 = arith.constant 0 : index
    %416 = vector.load %arg5[%c24_247, %c0_248, %c0_249] : memref<32x2x128xf32, #tpu.memory_space<vmem>>, vector<1x2x128xf32>
    %417 = vector.shape_cast %416 : vector<1x2x128xf32> to vector<2x128xf32>
    %418 = vector.extract_strided_slice %417 {offsets = [0, 0], sizes = [1, 128], strides = [1, 1]} : vector<2x128xf32> to vector<1x128xf32>
    %419 = vector.broadcast %418 : vector<1x128xf32> to vector<8x128xf32>
    %420 = arith.addf %415, %419 : vector<8x128xf32>
    %cst_250 = arith.constant 0.000000e+00 : f32
    %421 = vector.broadcast %cst_250 : f32 to vector<8x128xf32>
    %422 = arith.maximumf %420, %421 : vector<8x128xf32>
    %c3_251 = arith.constant 3 : index
    %c0_252 = arith.constant 0 : index
    %c0_253 = arith.constant 0 : index
    %423 = vector.load %arg6[%c3_251, %c0_252, %c0_253] : memref<4x8x128xf32, #tpu.memory_space<vmem>>, vector<1x8x128xf32>
    %424 = vector.shape_cast %423 : vector<1x8x128xf32> to vector<8x128xf32>
    %425 = arith.mulf %422, %424 : vector<8x128xf32>
    %426 = vector.extract_strided_slice %417 {offsets = [1, 0], sizes = [1, 128], strides = [1, 1]} : vector<2x128xf32> to vector<1x128xf32>
    %427 = vector.broadcast %426 : vector<1x128xf32> to vector<8x128xf32>
    %428 = arith.mulf %425, %427 : vector<8x128xf32>
    %429 = arith.addf %412, %428 : vector<8x128xf32>
    %c25 = arith.constant 25 : index
    %c0_254 = arith.constant 0 : index
    %c0_255 = arith.constant 0 : index
    %430 = vector.load %arg4[%c25, %c0_254, %c0_255] : memref<32x64x128xbf16, #tpu.memory_space<vmem>>, vector<1x64x128xbf16>
    %431 = vector.shape_cast %430 : vector<1x64x128xbf16> to vector<64x128xbf16>
    %cst_256 = arith.constant dense<0.000000e+00> : vector<8x128xf32>
    %432 = tpu.matmul %3, %431, %cst_256 {dimension_numbers = #tpu.dot_dimension_numbers<[1], [0], [0], [1], [0, 0, 1, 1], [], []>} : vector<8x64xbf16>, vector<64x128xbf16>, vector<8x128xf32> -> vector<8x128xf32>
    %c25_257 = arith.constant 25 : index
    %c0_258 = arith.constant 0 : index
    %c0_259 = arith.constant 0 : index
    %433 = vector.load %arg5[%c25_257, %c0_258, %c0_259] : memref<32x2x128xf32, #tpu.memory_space<vmem>>, vector<1x2x128xf32>
    %434 = vector.shape_cast %433 : vector<1x2x128xf32> to vector<2x128xf32>
    %435 = vector.extract_strided_slice %434 {offsets = [0, 0], sizes = [1, 128], strides = [1, 1]} : vector<2x128xf32> to vector<1x128xf32>
    %436 = vector.broadcast %435 : vector<1x128xf32> to vector<8x128xf32>
    %437 = arith.addf %432, %436 : vector<8x128xf32>
    %cst_260 = arith.constant 0.000000e+00 : f32
    %438 = vector.broadcast %cst_260 : f32 to vector<8x128xf32>
    %439 = arith.maximumf %437, %438 : vector<8x128xf32>
    %c3_261 = arith.constant 3 : index
    %c0_262 = arith.constant 0 : index
    %c0_263 = arith.constant 0 : index
    %440 = vector.load %arg6[%c3_261, %c0_262, %c0_263] : memref<4x8x128xf32, #tpu.memory_space<vmem>>, vector<1x8x128xf32>
    %441 = vector.shape_cast %440 : vector<1x8x128xf32> to vector<8x128xf32>
    %442 = arith.mulf %439, %441 : vector<8x128xf32>
    %443 = vector.extract_strided_slice %434 {offsets = [1, 0], sizes = [1, 128], strides = [1, 1]} : vector<2x128xf32> to vector<1x128xf32>
    %444 = vector.broadcast %443 : vector<1x128xf32> to vector<8x128xf32>
    %445 = arith.mulf %442, %444 : vector<8x128xf32>
    %446 = arith.addf %429, %445 : vector<8x128xf32>
    %c26 = arith.constant 26 : index
    %c0_264 = arith.constant 0 : index
    %c0_265 = arith.constant 0 : index
    %447 = vector.load %arg4[%c26, %c0_264, %c0_265] : memref<32x64x128xbf16, #tpu.memory_space<vmem>>, vector<1x64x128xbf16>
    %448 = vector.shape_cast %447 : vector<1x64x128xbf16> to vector<64x128xbf16>
    %cst_266 = arith.constant dense<0.000000e+00> : vector<8x128xf32>
    %449 = tpu.matmul %3, %448, %cst_266 {dimension_numbers = #tpu.dot_dimension_numbers<[1], [0], [0], [1], [0, 0, 1, 1], [], []>} : vector<8x64xbf16>, vector<64x128xbf16>, vector<8x128xf32> -> vector<8x128xf32>
    %c26_267 = arith.constant 26 : index
    %c0_268 = arith.constant 0 : index
    %c0_269 = arith.constant 0 : index
    %450 = vector.load %arg5[%c26_267, %c0_268, %c0_269] : memref<32x2x128xf32, #tpu.memory_space<vmem>>, vector<1x2x128xf32>
    %451 = vector.shape_cast %450 : vector<1x2x128xf32> to vector<2x128xf32>
    %452 = vector.extract_strided_slice %451 {offsets = [0, 0], sizes = [1, 128], strides = [1, 1]} : vector<2x128xf32> to vector<1x128xf32>
    %453 = vector.broadcast %452 : vector<1x128xf32> to vector<8x128xf32>
    %454 = arith.addf %449, %453 : vector<8x128xf32>
    %cst_270 = arith.constant 0.000000e+00 : f32
    %455 = vector.broadcast %cst_270 : f32 to vector<8x128xf32>
    %456 = arith.maximumf %454, %455 : vector<8x128xf32>
    %c3_271 = arith.constant 3 : index
    %c0_272 = arith.constant 0 : index
    %c0_273 = arith.constant 0 : index
    %457 = vector.load %arg6[%c3_271, %c0_272, %c0_273] : memref<4x8x128xf32, #tpu.memory_space<vmem>>, vector<1x8x128xf32>
    %458 = vector.shape_cast %457 : vector<1x8x128xf32> to vector<8x128xf32>
    %459 = arith.mulf %456, %458 : vector<8x128xf32>
    %460 = vector.extract_strided_slice %451 {offsets = [1, 0], sizes = [1, 128], strides = [1, 1]} : vector<2x128xf32> to vector<1x128xf32>
    %461 = vector.broadcast %460 : vector<1x128xf32> to vector<8x128xf32>
    %462 = arith.mulf %459, %461 : vector<8x128xf32>
    %463 = arith.addf %446, %462 : vector<8x128xf32>
    %c27 = arith.constant 27 : index
    %c0_274 = arith.constant 0 : index
    %c0_275 = arith.constant 0 : index
    %464 = vector.load %arg4[%c27, %c0_274, %c0_275] : memref<32x64x128xbf16, #tpu.memory_space<vmem>>, vector<1x64x128xbf16>
    %465 = vector.shape_cast %464 : vector<1x64x128xbf16> to vector<64x128xbf16>
    %cst_276 = arith.constant dense<0.000000e+00> : vector<8x128xf32>
    %466 = tpu.matmul %3, %465, %cst_276 {dimension_numbers = #tpu.dot_dimension_numbers<[1], [0], [0], [1], [0, 0, 1, 1], [], []>} : vector<8x64xbf16>, vector<64x128xbf16>, vector<8x128xf32> -> vector<8x128xf32>
    %c27_277 = arith.constant 27 : index
    %c0_278 = arith.constant 0 : index
    %c0_279 = arith.constant 0 : index
    %467 = vector.load %arg5[%c27_277, %c0_278, %c0_279] : memref<32x2x128xf32, #tpu.memory_space<vmem>>, vector<1x2x128xf32>
    %468 = vector.shape_cast %467 : vector<1x2x128xf32> to vector<2x128xf32>
    %469 = vector.extract_strided_slice %468 {offsets = [0, 0], sizes = [1, 128], strides = [1, 1]} : vector<2x128xf32> to vector<1x128xf32>
    %470 = vector.broadcast %469 : vector<1x128xf32> to vector<8x128xf32>
    %471 = arith.addf %466, %470 : vector<8x128xf32>
    %cst_280 = arith.constant 0.000000e+00 : f32
    %472 = vector.broadcast %cst_280 : f32 to vector<8x128xf32>
    %473 = arith.maximumf %471, %472 : vector<8x128xf32>
    %c3_281 = arith.constant 3 : index
    %c0_282 = arith.constant 0 : index
    %c0_283 = arith.constant 0 : index
    %474 = vector.load %arg6[%c3_281, %c0_282, %c0_283] : memref<4x8x128xf32, #tpu.memory_space<vmem>>, vector<1x8x128xf32>
    %475 = vector.shape_cast %474 : vector<1x8x128xf32> to vector<8x128xf32>
    %476 = arith.mulf %473, %475 : vector<8x128xf32>
    %477 = vector.extract_strided_slice %468 {offsets = [1, 0], sizes = [1, 128], strides = [1, 1]} : vector<2x128xf32> to vector<1x128xf32>
    %478 = vector.broadcast %477 : vector<1x128xf32> to vector<8x128xf32>
    %479 = arith.mulf %476, %478 : vector<8x128xf32>
    %480 = arith.addf %463, %479 : vector<8x128xf32>
    %c28 = arith.constant 28 : index
    %c0_284 = arith.constant 0 : index
    %c0_285 = arith.constant 0 : index
    %481 = vector.load %arg4[%c28, %c0_284, %c0_285] : memref<32x64x128xbf16, #tpu.memory_space<vmem>>, vector<1x64x128xbf16>
    %482 = vector.shape_cast %481 : vector<1x64x128xbf16> to vector<64x128xbf16>
    %cst_286 = arith.constant dense<0.000000e+00> : vector<8x128xf32>
    %483 = tpu.matmul %3, %482, %cst_286 {dimension_numbers = #tpu.dot_dimension_numbers<[1], [0], [0], [1], [0, 0, 1, 1], [], []>} : vector<8x64xbf16>, vector<64x128xbf16>, vector<8x128xf32> -> vector<8x128xf32>
    %c28_287 = arith.constant 28 : index
    %c0_288 = arith.constant 0 : index
    %c0_289 = arith.constant 0 : index
    %484 = vector.load %arg5[%c28_287, %c0_288, %c0_289] : memref<32x2x128xf32, #tpu.memory_space<vmem>>, vector<1x2x128xf32>
    %485 = vector.shape_cast %484 : vector<1x2x128xf32> to vector<2x128xf32>
    %486 = vector.extract_strided_slice %485 {offsets = [0, 0], sizes = [1, 128], strides = [1, 1]} : vector<2x128xf32> to vector<1x128xf32>
    %487 = vector.broadcast %486 : vector<1x128xf32> to vector<8x128xf32>
    %488 = arith.addf %483, %487 : vector<8x128xf32>
    %cst_290 = arith.constant 0.000000e+00 : f32
    %489 = vector.broadcast %cst_290 : f32 to vector<8x128xf32>
    %490 = arith.maximumf %488, %489 : vector<8x128xf32>
    %c3_291 = arith.constant 3 : index
    %c0_292 = arith.constant 0 : index
    %c0_293 = arith.constant 0 : index
    %491 = vector.load %arg6[%c3_291, %c0_292, %c0_293] : memref<4x8x128xf32, #tpu.memory_space<vmem>>, vector<1x8x128xf32>
    %492 = vector.shape_cast %491 : vector<1x8x128xf32> to vector<8x128xf32>
    %493 = arith.mulf %490, %492 : vector<8x128xf32>
    %494 = vector.extract_strided_slice %485 {offsets = [1, 0], sizes = [1, 128], strides = [1, 1]} : vector<2x128xf32> to vector<1x128xf32>
    %495 = vector.broadcast %494 : vector<1x128xf32> to vector<8x128xf32>
    %496 = arith.mulf %493, %495 : vector<8x128xf32>
    %497 = arith.addf %480, %496 : vector<8x128xf32>
    %c29 = arith.constant 29 : index
    %c0_294 = arith.constant 0 : index
    %c0_295 = arith.constant 0 : index
    %498 = vector.load %arg4[%c29, %c0_294, %c0_295] : memref<32x64x128xbf16, #tpu.memory_space<vmem>>, vector<1x64x128xbf16>
    %499 = vector.shape_cast %498 : vector<1x64x128xbf16> to vector<64x128xbf16>
    %cst_296 = arith.constant dense<0.000000e+00> : vector<8x128xf32>
    %500 = tpu.matmul %3, %499, %cst_296 {dimension_numbers = #tpu.dot_dimension_numbers<[1], [0], [0], [1], [0, 0, 1, 1], [], []>} : vector<8x64xbf16>, vector<64x128xbf16>, vector<8x128xf32> -> vector<8x128xf32>
    %c29_297 = arith.constant 29 : index
    %c0_298 = arith.constant 0 : index
    %c0_299 = arith.constant 0 : index
    %501 = vector.load %arg5[%c29_297, %c0_298, %c0_299] : memref<32x2x128xf32, #tpu.memory_space<vmem>>, vector<1x2x128xf32>
    %502 = vector.shape_cast %501 : vector<1x2x128xf32> to vector<2x128xf32>
    %503 = vector.extract_strided_slice %502 {offsets = [0, 0], sizes = [1, 128], strides = [1, 1]} : vector<2x128xf32> to vector<1x128xf32>
    %504 = vector.broadcast %503 : vector<1x128xf32> to vector<8x128xf32>
    %505 = arith.addf %500, %504 : vector<8x128xf32>
    %cst_300 = arith.constant 0.000000e+00 : f32
    %506 = vector.broadcast %cst_300 : f32 to vector<8x128xf32>
    %507 = arith.maximumf %505, %506 : vector<8x128xf32>
    %c3_301 = arith.constant 3 : index
    %c0_302 = arith.constant 0 : index
    %c0_303 = arith.constant 0 : index
    %508 = vector.load %arg6[%c3_301, %c0_302, %c0_303] : memref<4x8x128xf32, #tpu.memory_space<vmem>>, vector<1x8x128xf32>
    %509 = vector.shape_cast %508 : vector<1x8x128xf32> to vector<8x128xf32>
    %510 = arith.mulf %507, %509 : vector<8x128xf32>
    %511 = vector.extract_strided_slice %502 {offsets = [1, 0], sizes = [1, 128], strides = [1, 1]} : vector<2x128xf32> to vector<1x128xf32>
    %512 = vector.broadcast %511 : vector<1x128xf32> to vector<8x128xf32>
    %513 = arith.mulf %510, %512 : vector<8x128xf32>
    %514 = arith.addf %497, %513 : vector<8x128xf32>
    %c30 = arith.constant 30 : index
    %c0_304 = arith.constant 0 : index
    %c0_305 = arith.constant 0 : index
    %515 = vector.load %arg4[%c30, %c0_304, %c0_305] : memref<32x64x128xbf16, #tpu.memory_space<vmem>>, vector<1x64x128xbf16>
    %516 = vector.shape_cast %515 : vector<1x64x128xbf16> to vector<64x128xbf16>
    %cst_306 = arith.constant dense<0.000000e+00> : vector<8x128xf32>
    %517 = tpu.matmul %3, %516, %cst_306 {dimension_numbers = #tpu.dot_dimension_numbers<[1], [0], [0], [1], [0, 0, 1, 1], [], []>} : vector<8x64xbf16>, vector<64x128xbf16>, vector<8x128xf32> -> vector<8x128xf32>
    %c30_307 = arith.constant 30 : index
    %c0_308 = arith.constant 0 : index
    %c0_309 = arith.constant 0 : index
    %518 = vector.load %arg5[%c30_307, %c0_308, %c0_309] : memref<32x2x128xf32, #tpu.memory_space<vmem>>, vector<1x2x128xf32>
    %519 = vector.shape_cast %518 : vector<1x2x128xf32> to vector<2x128xf32>
    %520 = vector.extract_strided_slice %519 {offsets = [0, 0], sizes = [1, 128], strides = [1, 1]} : vector<2x128xf32> to vector<1x128xf32>
    %521 = vector.broadcast %520 : vector<1x128xf32> to vector<8x128xf32>
    %522 = arith.addf %517, %521 : vector<8x128xf32>
    %cst_310 = arith.constant 0.000000e+00 : f32
    %523 = vector.broadcast %cst_310 : f32 to vector<8x128xf32>
    %524 = arith.maximumf %522, %523 : vector<8x128xf32>
    %c3_311 = arith.constant 3 : index
    %c0_312 = arith.constant 0 : index
    %c0_313 = arith.constant 0 : index
    %525 = vector.load %arg6[%c3_311, %c0_312, %c0_313] : memref<4x8x128xf32, #tpu.memory_space<vmem>>, vector<1x8x128xf32>
    %526 = vector.shape_cast %525 : vector<1x8x128xf32> to vector<8x128xf32>
    %527 = arith.mulf %524, %526 : vector<8x128xf32>
    %528 = vector.extract_strided_slice %519 {offsets = [1, 0], sizes = [1, 128], strides = [1, 1]} : vector<2x128xf32> to vector<1x128xf32>
    %529 = vector.broadcast %528 : vector<1x128xf32> to vector<8x128xf32>
    %530 = arith.mulf %527, %529 : vector<8x128xf32>
    %531 = arith.addf %514, %530 : vector<8x128xf32>
    %c31 = arith.constant 31 : index
    %c0_314 = arith.constant 0 : index
    %c0_315 = arith.constant 0 : index
    %532 = vector.load %arg4[%c31, %c0_314, %c0_315] : memref<32x64x128xbf16, #tpu.memory_space<vmem>>, vector<1x64x128xbf16>
    %533 = vector.shape_cast %532 : vector<1x64x128xbf16> to vector<64x128xbf16>
    %cst_316 = arith.constant dense<0.000000e+00> : vector<8x128xf32>
    %534 = tpu.matmul %3, %533, %cst_316 {dimension_numbers = #tpu.dot_dimension_numbers<[1], [0], [0], [1], [0, 0, 1, 1], [], []>} : vector<8x64xbf16>, vector<64x128xbf16>, vector<8x128xf32> -> vector<8x128xf32>
    %c31_317 = arith.constant 31 : index
    %c0_318 = arith.constant 0 : index
    %c0_319 = arith.constant 0 : index
    %535 = vector.load %arg5[%c31_317, %c0_318, %c0_319] : memref<32x2x128xf32, #tpu.memory_space<vmem>>, vector<1x2x128xf32>
    %536 = vector.shape_cast %535 : vector<1x2x128xf32> to vector<2x128xf32>
    %537 = vector.extract_strided_slice %536 {offsets = [0, 0], sizes = [1, 128], strides = [1, 1]} : vector<2x128xf32> to vector<1x128xf32>
    %538 = vector.broadcast %537 : vector<1x128xf32> to vector<8x128xf32>
    %539 = arith.addf %534, %538 : vector<8x128xf32>
    %cst_320 = arith.constant 0.000000e+00 : f32
    %540 = vector.broadcast %cst_320 : f32 to vector<8x128xf32>
    %541 = arith.maximumf %539, %540 : vector<8x128xf32>
    %c3_321 = arith.constant 3 : index
    %c0_322 = arith.constant 0 : index
    %c0_323 = arith.constant 0 : index
    %542 = vector.load %arg6[%c3_321, %c0_322, %c0_323] : memref<4x8x128xf32, #tpu.memory_space<vmem>>, vector<1x8x128xf32>
    %543 = vector.shape_cast %542 : vector<1x8x128xf32> to vector<8x128xf32>
    %544 = arith.mulf %541, %543 : vector<8x128xf32>
    %545 = vector.extract_strided_slice %536 {offsets = [1, 0], sizes = [1, 128], strides = [1, 1]} : vector<2x128xf32> to vector<1x128xf32>
    %546 = vector.broadcast %545 : vector<1x128xf32> to vector<8x128xf32>
    %547 = arith.mulf %544, %546 : vector<8x128xf32>
    %548 = arith.addf %531, %547 : vector<8x128xf32>
    %c0_324 = arith.constant 0 : index
    %c0_325 = arith.constant 0 : index
    %549 = vector.load %arg9[%c0_324, %c0_325] : memref<8x128xf32, #tpu.memory_space<vmem>>, vector<8x128xf32>
    tpu.vector_store %arg9[%c0_324, %c0_325], %548 {strides = array<i32>} : memref<8x128xf32, #tpu.memory_space<vmem>>, vector<8x128xf32>,
    %c0_i32_326 = arith.constant 0 : i32
    %550 = arith.cmpi eq, %arg2, %c0_i32_326 : i32
    %551 = arith.extui %550 : i1 to i32
    %c0_i32_327 = arith.constant 0 : i32
    %552 = arith.cmpi ne, %551, %c0_i32_327 : i32
    scf.if %552 {
      %c0_328 = arith.constant 0 : index
      %c0_329 = arith.constant 0 : index
      %553 = vector.load %arg9[%c0_328, %c0_329] : memref<8x128xf32, #tpu.memory_space<vmem>>, vector<8x128xf32>
      %c0_330 = arith.constant 0 : index
      %c0_331 = arith.constant 0 : index
      %554 = vector.load %arg7[%c0_330, %c0_331] : memref<1x128xf32, #tpu.memory_space<vmem>>, vector<1x128xf32>
      %555 = vector.broadcast %554 : vector<1x128xf32> to vector<8x128xf32>
      %556 = arith.addf %553, %555 : vector<8x128xf32>
      %c0_332 = arith.constant 0 : index
      %c0_333 = arith.constant 0 : index
      %557 = vector.load %arg8[%c0_332, %c0_333] : memref<8x128xf32, #tpu.memory_space<vmem>>, vector<8x128xf32>
      tpu.vector_store %arg8[%c0_332, %c0_333], %556 {strides = array<i32>} : memref<8x128xf32, #tpu.memory_space<vmem>>, vector<8x128xf32>,
    } else {
    }
    return
  }
  func.func @transform_0(%arg0: i32, %arg1: i32, %arg2: i32) -> (i32, i32) {
    %c0_i32 = arith.constant 0 : i32
    %c0_i32_0 = arith.constant 0 : i32
    return %arg0, %c0_i32 : i32, i32
  }
  func.func @transform_1(%arg0: i32, %arg1: i32, %arg2: i32) -> (i32, i32, i32) {
    %c0_i32 = arith.constant 0 : i32
    %c0_i32_0 = arith.constant 0 : i32
    return %arg2, %c0_i32, %arg1 : i32, i32, i32
  }
  func.func @transform_2(%arg0: i32, %arg1: i32, %arg2: i32) -> (i32, i32, i32) {
    %c0_i32 = arith.constant 0 : i32
    %c0_i32_0 = arith.constant 0 : i32
    return %arg2, %c0_i32, %arg1 : i32, i32, i32
  }
  func.func @transform_3(%arg0: i32, %arg1: i32, %arg2: i32) -> (i32, i32, i32) {
    %c0_i32 = arith.constant 0 : i32
    return %arg2, %arg0, %arg1 : i32, i32, i32
  }
  func.func @transform_4(%arg0: i32, %arg1: i32, %arg2: i32) -> (i32, i32) {
    %c0_i32 = arith.constant 0 : i32
    %c0_i32_0 = arith.constant 0 : i32
    return %c0_i32, %arg1 : i32, i32
  }
  func.func @transform_5(%arg0: i32, %arg1: i32, %arg2: i32) -> (i32, i32) {
    %c0_i32 = arith.constant 0 : i32
    return %arg0, %arg1 : i32, i32
  }
}

</mosaic_0001>

<bundles_post_ra>
// kernel: tpu_custom_call.1
= control target key start
LH: loop header
LB: loop body
LE: loop exit
PB: predicated region body
PF: predicated region fallthrough
CT: control target
= control target key end

     0   :  { %10 = vsyncpa [#allocation4], 0  ;;  %s2842_s0 = inlined_call_operand.hbm [shape: bf16[8,64], index: 0, kind: input, shape index: {}]   ;;  %s2843_s1 = inlined_call_operand.hbm [shape: bf16[32,64,128], index: 1, kind: input, shape index: {}]   ;;  %s2844_s2 = inlined_call_operand.hbm [shape: f32[32,2,128], index: 2, kind: input, shape index: {}]   ;;  %s2845_s3 = inlined_call_operand.hbm [shape: f32[4,8,128], index: 3, kind: input, shape index: {}]   ;;  %s2846_s4 = inlined_call_operand.vmem [shape: f32[1,128], index: 4, kind: input, shape index: {}]   ;;  %s2847_s5 = inlined_call_operand.hbm [shape: f32[8,128], index: 5, kind: output, shape index: {}]  }
   0x1   :  { %11 = vsyncpa [#allocation7], 0 }
   0x2   :  { %12 = vsyncpa [#allocation10], 0  ;;  %s29_s20 = sshll.u32 %s2843_s1, 4  ;;  %s30_s20 = int_to_ptr.hbm [resolvable:$true] %s29_s20 }
   0x3   :  { %13 = vsyncpa [#allocation5], 0  ;;  %s2669_s21 = smov [#allocation6]   ;;  %s19_s25 = sshll.u32 %s2842_s0, 4  ;;  %s20_s25 = int_to_ptr.hbm [resolvable:$true] %s19_s25 }
   0x4   :  { %s31_s22 = sshll.u32 %s2669_s21, 4  ;;  %s2670_s26 = smov 64   ;;  %s32_s22 = int_to_ptr.vmem [resolvable:$true] %s31_s22 }
   0x5   :  { %s2671_s27 = smov 4   ;;  %s2672_s28 = smov [#allocation3]  }
   0x6   :  { %37 = dma.hbm_to_vmem [thread:$0]  %s30_s20, 16384, %s32_s22, [#allocation7], %s2670_s26, %s2670_s26, %s2671_s27  }
   0x7   :  { %s21_s29 = sshll.u32 %s2672_s28, 4  ;;  %s42_s7 = sshll.u32 %s2844_s2, 4  ;;  %s22_s29 = int_to_ptr.vmem [resolvable:$true] %s21_s29  ;;  %s43_s7 = int_to_ptr.hbm [resolvable:$true] %s42_s7 }
   0x8   :  { %24 = dma.hbm_to_vmem [thread:$0]  %s20_s25, 64, %s22_s29, [#allocation4]  }
   0x9   :  { %s2673_s1 = smov [#allocation8]   ;;  %s55_s0 = sshll.u32 %s2845_s3, 4  ;;  %s56_s0 = int_to_ptr.hbm [resolvable:$true] %s55_s0 }
   0xa   :  { %s44_s8 = sshll.u32 %s2673_s1, 4  ;;  %s2674_s11 = smov 32   ;;  %s45_s8 = int_to_ptr.vmem [resolvable:$true] %s44_s8 }
   0xb   :  { %s2675_s12 = smov 2   ;;  %s2676_s13 = smov [#allocation9]  }
   0xc   :  { %50 = dma.hbm_to_vmem [thread:$0]  %s43_s7, 1024, %s45_s8, [#allocation7], %s2674_s11, %s2674_s11, %s2675_s12  }
   0xd   :  { %s57_s14 = sshll.u32 %s2676_s13, 4  ;;  %s2677_s15 = smov 128   ;;  %s58_s14 = int_to_ptr.vmem [resolvable:$true] %s57_s14 }
   0xe   :  { %s2678_s16 = smov 8  }
   0xf   :  { %63 = dma.hbm_to_vmem [thread:$0]  %s56_s0, 512, %s58_s14, [#allocation10], %s2677_s15, %s2677_s15, %s2678_s16  }
  0x10   :  { %2661 = dma.done.wait [#allocation4], 64  }
  0x11   :  { %2662 = vsyncadd [#allocation4], 4294967232 }
  0x12   :  { %2663 = dma.done.wait [#allocation7], 17408  }
  0x13   :  { %2664 = vsyncadd [#allocation7], 4294949888 }
  0x14   :  { %2665 = dma.done.wait [#allocation10], 512  }
  0x15   :  { %2666 = vsyncadd [#allocation10], 4294966784  ;;  %v2404_v0 = vld [vmem:[#allocation6 + $0x18] sm:$0xff]  ;;  %v2403_v4 = vld [vmem:[#allocation6 + $0x10] sm:$0xff]  ;;  %vm124_vm0 = vcmask 523264   ;;  %s2679_s17 = smov [#allocation11]  }
  0x16   :  { %v2408_v1 = vld [vmem:[#allocation6 + $0x38] sm:$0xff]  ;;  %132 = vmatpush.bf16.msra.mxu0 %v2404_v0  ;;  %v2407_v5 = vld [vmem:[#allocation6 + $0x30] sm:$0xff]  ;;  %v2402_v8 = vld [vmem:[#allocation6 + $0x8] sm:$0xff]  ;;  %s1843_s18 = sshll.u32 %s2679_s17, 4  ;;  %s1845_s21 = sshll.u32 %s2847_s5, 4  ;;  %s1844_s18 = int_to_ptr.vmem [resolvable:$true] %s1843_s18  ;;  %s1846_s21 = int_to_ptr.hbm [resolvable:$true] %s1845_s21 }
  0x17   :  { %v2412_v2 = vld [vmem:[#allocation6 + $0x58] sm:$0xff]  ;;  %187 = vmatpush.bf16.msra.mxu1 %v2408_v1  ;;  %v2411_v6 = vld [vmem:[#allocation6 + $0x50] sm:$0xff]  ;;  %v2406_v9 = vld [vmem:[#allocation6 + $0x28] sm:$0xff] }
  0x18   :  { %v2416_v3 = vld [vmem:[#allocation6 + $0x78] sm:$0xff]  ;;  %241 = vmatpush.bf16.msra.mxu2 %v2412_v2  ;;  %v2415_v7 = vld [vmem:[#allocation6 + $0x70] sm:$0xff]  ;;  %v2410_v10 = vld [vmem:[#allocation6 + $0x48] sm:$0xff] }
  0x19   :  { %295 = vmatpush.bf16.msra.mxu3 %v2416_v3  ;;  %v2414_v11 = vld [vmem:[#allocation6 + $0x68] sm:$0xff]  ;;  %v2401_v12 = vld [vmem:[#allocation6] sm:$0xff]  ;;  %v2428_v16 = vld [vmem:[#allocation6 + $0xd8] sm:$0xff] }
  0x1a   :  { %133 = vmatpush.bf16.msra.mxu0 %v2403_v4  ;;  %v2405_v13 = vld [vmem:[#allocation6 + $0x20] sm:$0xff]  ;;  %v2420_v17 = vld [vmem:[#allocation6 + $0x98] sm:$0xff]  ;;  %v2427_v21 = vld [vmem:[#allocation6 + $0xd0] sm:$0xff] }
  0x1b   :  { %188 = vmatpush.bf16.msra.mxu1 %v2407_v5  ;;  %v2409_v14 = vld [vmem:[#allocation6 + $0x40] sm:$0xff]  ;;  %v2722_v18 = vld [vmem:[#allocation3] sm:$0xf]  ;;  %v2419_v22 = vld [vmem:[#allocation6 + $0x90] sm:$0xff] }
  0x1c   :  { %242 = vmatpush.bf16.msra.mxu2 %v2411_v6  ;;  %v2413_v15 = vld [vmem:[#allocation6 + $0x60] sm:$0xff]  ;;  %v2424_v19 = vld [vmem:[#allocation6 + $0xb8] sm:$0xff]  ;;  %v2423_v23 = vld [vmem:[#allocation6 + $0xb0] sm:$0xff] }
  0x1d   :  { %296 = vmatpush.bf16.msra.mxu3 %v2415_v7  ;;  %v2432_v20 = vld [vmem:[#allocation6 + $0xf8] sm:$0xff]  ;;  %v2431_v24 = vld [vmem:[#allocation6 + $0xf0] sm:$0xff]  ;;  %v2426_v25 = vld [vmem:[#allocation6 + $0xc8] sm:$0xff] }
  0x1e   :  { %134 = vmatpush.bf16.msra.mxu0 %v2402_v8  ;;  %v2418_v26 = vld [vmem:[#allocation6 + $0x88] sm:$0xff]  ;;  %v2425_v29 = vld [vmem:[#allocation6 + $0xc0] sm:$0xff]  ;;  %v2444_v31 = vld [vmem:[#allocation6 + $0x158] sm:$0xff] }
  0x1f   :  { %189 = vmatpush.bf16.msra.mxu1 %v2406_v9  ;;  %v2422_v27 = vld [vmem:[#allocation6 + $0xa8] sm:$0xff]  ;;  %v2417_v30 = vld [vmem:[#allocation6 + $0x80] sm:$0xff]  ;;  %v2436_v32 = vld [vmem:[#allocation6 + $0x118] sm:$0xff] }
  0x20   :  { %243 = vmatpush.bf16.msra.mxu2 %v2410_v10  ;;  %v2430_v28 = vld [vmem:[#allocation6 + $0xe8] sm:$0xff]  ;;  %v2421_v33 = vld [vmem:[#allocation6 + $0xa0] sm:$0xff]  ;;  %v2440_v35 = vld [vmem:[#allocation6 + $0x138] sm:$0xff] }
  0x21   :  { %297 = vmatpush.bf16.msra.mxu3 %v2414_v11  ;;  %v2429_v34 = vld [vmem:[#allocation6 + $0xe0] sm:$0xff]  ;;  %v2448_v36 = vld [vmem:[#allocation6 + $0x178] sm:$0xff]  ;;  %v2443_v37 = vld [vmem:[#allocation6 + $0x150] sm:$0xff] }
  0x22   :  { %135 = vmatpush.bf16.msra.mxu0 %v2401_v12  ;;  %v2435_v38 = vld [vmem:[#allocation6 + $0x110] sm:$0xff]  ;;  %v2442_v41 = vld [vmem:[#allocation6 + $0x148] sm:$0xff]  ;;  %v2441_v45 = vld [vmem:[#allocation6 + $0x140] sm:$0xff] }
  0x23   :  { %190 = vmatpush.bf16.msra.mxu1 %v2405_v13  ;;  %v2439_v39 = vld [vmem:[#allocation6 + $0x130] sm:$0xff]  ;;  %v2434_v42 = vld [vmem:[#allocation6 + $0x108] sm:$0xff]  ;;  %v2460_v46 = vld [vmem:[#allocation6 + $0x1d8] sm:$0xff] }
  0x24   :  { %244 = vmatpush.bf16.msra.mxu2 %v2409_v14  ;;  %v2447_v40 = vld [vmem:[#allocation6 + $0x170] sm:$0xff]  ;;  %v2438_v43 = vld [vmem:[#allocation6 + $0x128] sm:$0xff]  ;;  %v2433_v47 = vld [vmem:[#allocation6 + $0x100] sm:$0xff] }
  0x25   :  { %298 = vmatpush.bf16.msra.mxu3 %v2413_v15  ;;  %1873 = vmatmul.msk.bf16.vlgmr.msra.gmra.mxu0 %vm124_vm0, %v2722_v18  ;;  %v2446_v44 = vld [vmem:[#allocation6 + $0x168] sm:$0xff]  ;;  %v2437_v48 = vld [vmem:[#allocation6 + $0x120] sm:$0xff]  ;;  %v2452_v50 = vld [vmem:[#allocation6 + $0x198] sm:$0xff] }
  0x26   :  { %349 = vmatpush.bf16.msrb.mxu0 %v2420_v17  ;;  %1890 = vmatmul.msk.bf16.vlgmr.msra.gmra.mxu1 %vm124_vm0, %v2722_v18  ;;  %v2445_v49 = vld [vmem:[#allocation6 + $0x160] sm:$0xff]  ;;  %v2456_v51 = vld [vmem:[#allocation6 + $0x1b8] sm:$0xff]  ;;  %v2459_v53 = vld [vmem:[#allocation6 + $0x1d0] sm:$0xff] }
  0x27   :  { %1907 = vmatmul.msk.bf16.vlgmr.msra.gmra.mxu2 %vm124_vm0, %v2722_v18  ;;  %403 = vmatpush.bf16.msrb.mxu1 %v2424_v19  ;;  %v2464_v52 = vld [vmem:[#allocation6 + $0x1f8] sm:$0xff]  ;;  %v2455_v54 = vld [vmem:[#allocation6 + $0x1b0] sm:$0xff]  ;;  %v2458_v57 = vld [vmem:[#allocation6 + $0x1c8] sm:$0xff] }
  0x28   :  { %457 = vmatpush.bf16.msrb.mxu2 %v2428_v16  ;;  %1924 = vmatmul.msk.bf16.vlgmr.msra.gmra.mxu3 %vm124_vm0, %v2722_v18  ;;  %v2451_v55 = vld [vmem:[#allocation6 + $0x190] sm:$0xff]  ;;  %v2454_v58 = vld [vmem:[#allocation6 + $0x1a8] sm:$0xff]  ;;  %v2457_v61 = vld [vmem:[#allocation6 + $0x1c0] sm:$0xff] }
  0x29   :  { %511 = vmatpush.bf16.msrb.mxu3 %v2432_v20  ;;  %v2463_v56 = vld [vmem:[#allocation6 + $0x1f0] sm:$0xff]  ;;  %v2450_v59 = vld [vmem:[#allocation6 + $0x188] sm:$0xff]  ;;  %v2453_v62 = vld [vmem:[#allocation6 + $0x1a0] sm:$0xff] }
  0x2a   :  { %350 = vmatpush.bf16.msrb.mxu0 %v2419_v22  ;;  %v2462_v60 = vld [vmem:[#allocation6 + $0x1e8] sm:$0xff]  ;;  %v2476_v63 = vld [vmem:[#allocation6 + $0x258] sm:$0xff]  ;;  %v2449_v1 = vld [vmem:[#allocation6 + $0x180] sm:$0xff] }
  0x2b   :  { %404 = vmatpush.bf16.msrb.mxu1 %v2423_v23  ;;  %v2472_v0 = vld [vmem:[#allocation6 + $0x238] sm:$0xff]  ;;  %v2461_v2 = vld [vmem:[#allocation6 + $0x1e0] sm:$0xff]  ;;  %v2475_v5 = vld [vmem:[#allocation6 + $0x250] sm:$0xff] }
  0x2c   :  { %458 = vmatpush.bf16.msrb.mxu2 %v2427_v21  ;;  %v2468_v3 = vld [vmem:[#allocation6 + $0x218] sm:$0xff]  ;;  %v2471_v6 = vld [vmem:[#allocation6 + $0x230] sm:$0xff]  ;;  %v2474_v9 = vld [vmem:[#allocation6 + $0x248] sm:$0xff] }
  0x2d   :  { %512 = vmatpush.bf16.msrb.mxu3 %v2431_v24  ;;  %v2480_v4 = vld [vmem:[#allocation6 + $0x278] sm:$0xff]  ;;  %v2467_v7 = vld [vmem:[#allocation6 + $0x210] sm:$0xff]  ;;  %v2466_v10 = vld [vmem:[#allocation6 + $0x208] sm:$0xff] }
  0x2e   :  { %351 = vmatpush.bf16.msrb.mxu0 %v2418_v26  ;;  %v2479_v8 = vld [vmem:[#allocation6 + $0x270] sm:$0xff]  ;;  %v2470_v11 = vld [vmem:[#allocation6 + $0x228] sm:$0xff]  ;;  %v2473_v13 = vld [vmem:[#allocation6 + $0x240] sm:$0xff] }
  0x2f   :  { %405 = vmatpush.bf16.msrb.mxu1 %v2422_v27  ;;  %v2478_v12 = vld [vmem:[#allocation6 + $0x268] sm:$0xff]  ;;  %v2465_v14 = vld [vmem:[#allocation6 + $0x200] sm:$0xff]  ;;  %v2492_v17 = vld [vmem:[#allocation6 + $0x2d8] sm:$0xff] }
  0x30   :  { %459 = vmatpush.bf16.msrb.mxu2 %v2426_v25  ;;  %v2469_v15 = vld [vmem:[#allocation6 + $0x220] sm:$0xff]  ;;  %v2484_v19 = vld [vmem:[#allocation6 + $0x298] sm:$0xff]  ;;  %v2491_v22 = vld [vmem:[#allocation6 + $0x2d0] sm:$0xff] }
  0x31   :  { %513 = vmatpush.bf16.msrb.mxu3 %v2430_v28  ;;  %v2477_v16 = vld [vmem:[#allocation6 + $0x260] sm:$0xff]  ;;  %v2488_v20 = vld [vmem:[#allocation6 + $0x2b8] sm:$0xff]  ;;  %v2483_v23 = vld [vmem:[#allocation6 + $0x290] sm:$0xff] }
  0x32   :  { %352 = vmatpush.bf16.msrb.mxu0 %v2417_v30  ;;  %v2496_v21 = vld [vmem:[#allocation6 + $0x2f8] sm:$0xff]  ;;  %v2487_v24 = vld [vmem:[#allocation6 + $0x2b0] sm:$0xff]  ;;  %v2490_v26 = vld [vmem:[#allocation6 + $0x2c8] sm:$0xff] }
  0x33   :  { %406 = vmatpush.bf16.msrb.mxu1 %v2421_v33  ;;  %v2495_v25 = vld [vmem:[#allocation6 + $0x2f0] sm:$0xff]  ;;  %v2482_v27 = vld [vmem:[#allocation6 + $0x288] sm:$0xff]  ;;  %v2489_v30 = vld [vmem:[#allocation6 + $0x2c0] sm:$0xff] }
  0x34   :  { %460 = vmatpush.bf16.msrb.mxu2 %v2425_v29  ;;  %v2486_v28 = vld [vmem:[#allocation6 + $0x2a8] sm:$0xff]  ;;  %v2485_v33 = vld [vmem:[#allocation6 + $0x2a0] sm:$0xff] }
  0x35   :  { %514 = vmatpush.bf16.msrb.mxu3 %v2429_v34  ;;  %1941 = vmatmul.msk.bf16.vlgmr.msrb.gmra.mxu0 %vm124_vm0, %v2722_v18  ;;  %v2494_v29 = vld [vmem:[#allocation6 + $0x2e8] sm:$0xff]  ;;  %v2493_v34 = vld [vmem:[#allocation6 + $0x2e0] sm:$0xff] }
  0x36   :  { %565 = vmatpush.bf16.msra.mxu0 %v2436_v32  ;;  %1958 = vmatmul.msk.bf16.vlgmr.msrb.gmra.mxu1 %vm124_vm0, %v2722_v18  ;;  %v2481_v32 = vld [vmem:[#allocation6 + $0x280] sm:$0xff] }
  0x37   :  { %621 = vmatpush.bf16.msra.mxu1 %v2440_v35  ;;  %1975 = vmatmul.msk.bf16.vlgmr.msrb.gmra.mxu2 %vm124_vm0, %v2722_v18  ;;  %v2500_v35 = vld [vmem:[#allocation6 + $0x318] sm:$0xff] }
  0x38   :  { %675 = vmatpush.bf16.msra.mxu2 %v2444_v31  ;;  %1992 = vmatmul.msk.bf16.vlgmr.msrb.gmra.mxu3 %vm124_vm0, %v2722_v18  ;;  %v2508_v31 = vld [vmem:[#allocation6 + $0x358] sm:$0xff] }
  0x39   :  { %729 = vmatpush.bf16.msra.mxu3 %v2448_v36  ;;  %v2504_v36 = vld [vmem:[#allocation6 + $0x338] sm:$0xff] }
  0x3a   :  { %566 = vmatpush.bf16.msra.mxu0 %v2435_v38  ;;  %v2507_v38 = vld [vmem:[#allocation6 + $0x350] sm:$0xff] }
  0x3b   :  { %622 = vmatpush.bf16.msra.mxu1 %v2439_v39  ;;  %v2499_v39 = vld [vmem:[#allocation6 + $0x310] sm:$0xff] }
  0x3c   :  { %676 = vmatpush.bf16.msra.mxu2 %v2443_v37  ;;  %v2512_v37 = vld [vmem:[#allocation6 + $0x378] sm:$0xff] }
  0x3d   :  { %730 = vmatpush.bf16.msra.mxu3 %v2447_v40  ;;  %v2503_v40 = vld [vmem:[#allocation6 + $0x330] sm:$0xff] }
  0x3e   :  { %567 = vmatpush.bf16.msra.mxu0 %v2434_v42  ;;  %v2506_v42 = vld [vmem:[#allocation6 + $0x348] sm:$0xff] }
  0x3f   :  { %623 = vmatpush.bf16.msra.mxu1 %v2438_v43  ;;  %v2502_v43 = vld [vmem:[#allocation6 + $0x328] sm:$0xff] }
  0x40   :  { %677 = vmatpush.bf16.msra.mxu2 %v2442_v41  ;;  %v2511_v41 = vld [vmem:[#allocation6 + $0x370] sm:$0xff] }
  0x41   :  { %731 = vmatpush.bf16.msra.mxu3 %v2446_v44  ;;  %v2498_v44 = vld [vmem:[#allocation6 + $0x308] sm:$0xff] }
  0x42   :  { %568 = vmatpush.bf16.msra.mxu0 %v2433_v47  ;;  %v2501_v47 = vld [vmem:[#allocation6 + $0x320] sm:$0xff] }
  0x43   :  { %624 = vmatpush.bf16.msra.mxu1 %v2437_v48  ;;  %v2524_v48 = vld [vmem:[#allocation6 + $0x3d8] sm:$0xff] }
  0x44   :  { %678 = vmatpush.bf16.msra.mxu2 %v2441_v45  ;;  %v2510_v45 = vld [vmem:[#allocation6 + $0x368] sm:$0xff] }
  0x45   :  { %732 = vmatpush.bf16.msra.mxu3 %v2445_v49  ;;  %2009 = vmatmul.msk.bf16.vlgmr.msra.gmra.mxu0 %vm124_vm0, %v2722_v18  ;;  %v2520_v49 = vld [vmem:[#allocation6 + $0x3b8] sm:$0xff] }
  0x46   :  { %783 = vmatpush.bf16.msrb.mxu0 %v2452_v50  ;;  %2026 = vmatmul.msk.bf16.vlgmr.msra.gmra.mxu1 %vm124_vm0, %v2722_v18  ;;  %v2497_v50 = vld [vmem:[#allocation6 + $0x300] sm:$0xff] }
  0x47   :  { %837 = vmatpush.bf16.msrb.mxu1 %v2456_v51  ;;  %2043 = vmatmul.msk.bf16.vlgmr.msra.gmra.mxu2 %vm124_vm0, %v2722_v18  ;;  %v2509_v51 = vld [vmem:[#allocation6 + $0x360] sm:$0xff] }
  0x48   :  { %891 = vmatpush.bf16.msrb.mxu2 %v2460_v46  ;;  %2060 = vmatmul.msk.bf16.vlgmr.msra.gmra.mxu3 %vm124_vm0, %v2722_v18  ;;  %v2505_v46 = vld [vmem:[#allocation6 + $0x340] sm:$0xff] }
  0x49   :  { %945 = vmatpush.bf16.msrb.mxu3 %v2464_v52  ;;  %v2516_v52 = vld [vmem:[#allocation6 + $0x398] sm:$0xff] }
  0x4a   :  { %784 = vmatpush.bf16.msrb.mxu0 %v2451_v55  ;;  %v2519_v55 = vld [vmem:[#allocation6 + $0x3b0] sm:$0xff] }
  0x4b   :  { %838 = vmatpush.bf16.msrb.mxu1 %v2455_v54  ;;  %v2523_v54 = vld [vmem:[#allocation6 + $0x3d0] sm:$0xff] }
  0x4c   :  { %892 = vmatpush.bf16.msrb.mxu2 %v2459_v53  ;;  %v2528_v53 = vld [vmem:[#allocation6 + $0x3f8] sm:$0xff] }
  0x4d   :  { %946 = vmatpush.bf16.msrb.mxu3 %v2463_v56  ;;  %v2515_v56 = vld [vmem:[#allocation6 + $0x390] sm:$0xff] }
  0x4e   :  { %785 = vmatpush.bf16.msrb.mxu0 %v2450_v59  ;;  %v2518_v59 = vld [vmem:[#allocation6 + $0x3a8] sm:$0xff] }
  0x4f   :  { %839 = vmatpush.bf16.msrb.mxu1 %v2454_v58  ;;  %v2522_v58 = vld [vmem:[#allocation6 + $0x3c8] sm:$0xff] }
  0x50   :  { %893 = vmatpush.bf16.msrb.mxu2 %v2458_v57  ;;  %v2527_v57 = vld [vmem:[#allocation6 + $0x3f0] sm:$0xff] }
  0x51   :  { %947 = vmatpush.bf16.msrb.mxu3 %v2462_v60  ;;  %v2514_v60 = vld [vmem:[#allocation6 + $0x388] sm:$0xff] }
  0x52   :  { %786 = vmatpush.bf16.msrb.mxu0 %v2449_v1  ;;  %v2525_v1 = vld [vmem:[#allocation6 + $0x3e0] sm:$0xff] }
  0x53   :  { %840 = vmatpush.bf16.msrb.mxu1 %v2453_v62  ;;  %v2521_v62 = vld [vmem:[#allocation6 + $0x3c0] sm:$0xff] }
  0x54   :  { %894 = vmatpush.bf16.msrb.mxu2 %v2457_v61  ;;  %v2526_v61 = vld [vmem:[#allocation6 + $0x3e8] sm:$0xff] }
  0x55   :  { %948 = vmatpush.bf16.msrb.mxu3 %v2461_v2  ;;  %2077 = vmatmul.msk.bf16.vlgmr.msrb.gmra.mxu0 %vm124_vm0, %v2722_v18 }
  0x56   :  { %999 = vmatpush.bf16.msra.mxu0 %v2468_v3  ;;  %2094 = vmatmul.msk.bf16.vlgmr.msrb.gmra.mxu1 %vm124_vm0, %v2722_v18 }
  0x57   :  { %1055 = vmatpush.bf16.msra.mxu1 %v2472_v0  ;;  %2111 = vmatmul.msk.bf16.vlgmr.msrb.gmra.mxu2 %vm124_vm0, %v2722_v18  ;;  %v2517_v0 = vld [vmem:[#allocation6 + $0x3a0] sm:$0xff] }
  0x58   :  { %1109 = vmatpush.bf16.msra.mxu2 %v2476_v63  ;;  %2128 = vmatmul.msk.bf16.vlgmr.msrb.gmra.mxu3 %vm124_vm0, %v2722_v18  ;;  %v2513_v63 = vld [vmem:[#allocation6 + $0x380] sm:$0xff] }
  0x59   :  { %1163 = vmatpush.bf16.msra.mxu3 %v2480_v4 }
  0x5a   :  { %1000 = vmatpush.bf16.msra.mxu0 %v2467_v7 }
  0x5b   :  { %1056 = vmatpush.bf16.msra.mxu1 %v2471_v6 }
  0x5c   :  { %1110 = vmatpush.bf16.msra.mxu2 %v2475_v5 }
  0x5d   :  { %1164 = vmatpush.bf16.msra.mxu3 %v2479_v8 }
  0x5e   :  { %1001 = vmatpush.bf16.msra.mxu0 %v2466_v10 }
  0x5f   :  { %1057 = vmatpush.bf16.msra.mxu1 %v2470_v11 }
  0x60   :  { %1111 = vmatpush.bf16.msra.mxu2 %v2474_v9 }
  0x61   :  { %1165 = vmatpush.bf16.msra.mxu3 %v2478_v12  ;;  %v98_v12 = vld [vmem:[#allocation8] sm:$0x3] }
  0x62   :  { %1002 = vmatpush.bf16.msra.mxu0 %v2465_v14  ;;  %v211_v14 = vld [vmem:[#allocation8 + $0x4] sm:$0x3] }
  0x63   :  { %1058 = vmatpush.bf16.msra.mxu1 %v2469_v15  ;;  %v99_v15 = vperm.slane %v98_v12, 0 }
  0x64   :  { %1112 = vmatpush.bf16.msra.mxu2 %v2473_v13  ;;  %v157_v13 = vld [vmem:[#allocation8 + $0x2] sm:$0x3] }
  0x65   :  { %1166 = vmatpush.bf16.msra.mxu3 %v2477_v16  ;;  %2145 = vmatmul.msk.bf16.vlgmr.msra.gmra.mxu0 %vm124_vm0, %v2722_v18  ;;  %v158_v16 = vperm.slane %v157_v13, 0 }
  0x66   :  { %1217 = vmatpush.bf16.msrb.mxu0 %v2484_v19  ;;  %2162 = vmatmul.msk.bf16.vlgmr.msra.gmra.mxu1 %vm124_vm0, %v2722_v18  ;;  %v212_v19 = vperm.slane %v211_v14, 0 }
  0x67   :  { %1271 = vmatpush.bf16.msrb.mxu1 %v2488_v20  ;;  %2179 = vmatmul.msk.bf16.vlgmr.msra.gmra.mxu2 %vm124_vm0, %v2722_v18 }
  0x68   :  { %1325 = vmatpush.bf16.msrb.mxu2 %v2492_v17  ;;  %2196 = vmatmul.msk.bf16.vlgmr.msra.gmra.mxu3 %vm124_vm0, %v2722_v18 }
  0x69   :  { %1379 = vmatpush.bf16.msrb.mxu3 %v2496_v21 }
  0x6a   :  { %1218 = vmatpush.bf16.msrb.mxu0 %v2483_v23 }
  0x6b   :  { %1272 = vmatpush.bf16.msrb.mxu1 %v2487_v24 }
  0x6c   :  { %1326 = vmatpush.bf16.msrb.mxu2 %v2491_v22 }
  0x6d   :  { %1380 = vmatpush.bf16.msrb.mxu3 %v2495_v25  ;;  %v319_v25 = vld [vmem:[#allocation8 + $0x8] sm:$0x3] }
  0x6e   :  { %1219 = vmatpush.bf16.msrb.mxu0 %v2482_v27 }
  0x6f   :  { %1273 = vmatpush.bf16.msrb.mxu1 %v2486_v28 }
  0x70   :  { %1327 = vmatpush.bf16.msrb.mxu2 %v2490_v26 }
  0x71   :  { %1381 = vmatpush.bf16.msrb.mxu3 %v2494_v29 }
  0x72   :  { %1220 = vmatpush.bf16.msrb.mxu0 %v2481_v32  ;;  %v373_v32 = vld [vmem:[#allocation8 + $0xa] sm:$0x3] }
  0x73   :  { %1274 = vmatpush.bf16.msrb.mxu1 %v2485_v33 }
  0x74   :  { %1328 = vmatpush.bf16.msrb.mxu2 %v2489_v30  ;;  %v320_v30 = vperm.slane %v319_v25, 0 }
  0x75   :  { %1382 = vmatpush.bf16.msrb.mxu3 %v2493_v34  ;;  %2213 = vmatmul.msk.bf16.vlgmr.msrb.gmra.mxu0 %vm124_vm0, %v2722_v18 }
  0x76   :  { %1433 = vmatpush.bf16.msra.mxu0 %v2500_v35  ;;  %2230 = vmatmul.msk.bf16.vlgmr.msrb.gmra.mxu1 %vm124_vm0, %v2722_v18 }
  0x77   :  { %1489 = vmatpush.bf16.msra.mxu1 %v2504_v36  ;;  %2247 = vmatmul.msk.bf16.vlgmr.msrb.gmra.mxu2 %vm124_vm0, %v2722_v18 }
  0x78   :  { %1543 = vmatpush.bf16.msra.mxu2 %v2508_v31  ;;  %2264 = vmatmul.msk.bf16.vlgmr.msrb.gmra.mxu3 %vm124_vm0, %v2722_v18  ;;  %v2788_v31 = vld [vmem:[#allocation9] sm:$0xff] }
  0x79   :  { %1597 = vmatpush.bf16.msra.mxu3 %v2512_v37 }
  0x7a   :  { %1434 = vmatpush.bf16.msra.mxu0 %v2499_v39  ;;  %v198_v39 = vperm.slane %v157_v13, 1 }
  0x7b   :  { %1490 = vmatpush.bf16.msra.mxu1 %v2503_v40  ;;  %v427_v40 = vld [vmem:[#allocation8 + $0xc] sm:$0x3] }
  0x7c   :  { %1544 = vmatpush.bf16.msra.mxu2 %v2507_v38  ;;  %v144_v38 = vperm.slane %v98_v12, 1  ;;  %v645_v12 = vld [vmem:[#allocation8 + $0x14] sm:$0x3] }
  0x7d   :  { %1598 = vmatpush.bf16.msra.mxu3 %v2511_v41 }
  0x7e   :  { %1435 = vmatpush.bf16.msra.mxu0 %v2498_v44 }
  0x7f   :  { %1491 = vmatpush.bf16.msra.mxu1 %v2502_v43 }
  0x80   :  { %1545 = vmatpush.bf16.msra.mxu2 %v2506_v42 }
  0x81   :  { %1599 = vmatpush.bf16.msra.mxu3 %v2510_v45  ;;  %v374_v45 = vperm.slane %v373_v32, 0 }
  0x82   :  { %1436 = vmatpush.bf16.msra.mxu0 %v2497_v50  ;;  %v481_v50 = vld [vmem:[#allocation8 + $0xe] sm:$0x3] }
  0x83   :  { %1492 = vmatpush.bf16.msra.mxu1 %v2501_v47  ;;  %v252_v47 = vperm.slane %v211_v14, 1 }
  0x84   :  { %1546 = vmatpush.bf16.msra.mxu2 %v2505_v46 }
  0x85   :  { %1600 = vmatpush.bf16.msra.mxu3 %v2509_v51  ;;  %2281 = vmatmul.msk.bf16.vlgmr.msra.gmra.mxu0 %vm124_vm0, %v2722_v18 }
  0x86   :  { %1651 = vmatpush.bf16.msrb.mxu0 %v2516_v52  ;;  %2298 = vmatmul.msk.bf16.vlgmr.msra.gmra.mxu1 %vm124_vm0, %v2722_v18 }
  0x87   :  { %1705 = vmatpush.bf16.msrb.mxu1 %v2520_v49  ;;  %2315 = vmatmul.msk.bf16.vlgmr.msra.gmra.mxu2 %vm124_vm0, %v2722_v18  ;;  %v428_v49 = vperm.slane %v427_v40, 0 }
  0x88   :  { %1759 = vmatpush.bf16.msrb.mxu2 %v2524_v48  ;;  %2332 = vmatmul.msk.bf16.vlgmr.msra.gmra.mxu3 %vm124_vm0, %v2722_v18 }
  0x89   :  { %1813 = vmatpush.bf16.msrb.mxu3 %v2528_v53 }
  0x8a   :  { %1652 = vmatpush.bf16.msrb.mxu0 %v2515_v56  ;;  %v2793_v56 = vld [vmem:[#allocation8 + $0x10] sm:$0x3] }
  0x8b   :  { %1706 = vmatpush.bf16.msrb.mxu1 %v2519_v55 }
  0x8c   :  { %1760 = vmatpush.bf16.msrb.mxu2 %v2523_v54 }
  0x8d   :  { %1814 = vmatpush.bf16.msrb.mxu3 %v2527_v57 }
  0x8e   :  { %1653 = vmatpush.bf16.msrb.mxu0 %v2514_v60 }
  0x8f   :  { %1707 = vmatpush.bf16.msrb.mxu1 %v2518_v59 }
  0x90   :  { %1761 = vmatpush.bf16.msrb.mxu2 %v2522_v58 }
  0x91   :  { %1815 = vmatpush.bf16.msrb.mxu3 %v2526_v61  ;;  %v482_v61 = vperm.slane %v481_v50, 0 }
  0x92   :  { %1654 = vmatpush.bf16.msrb.mxu0 %v2513_v63 }
  0x93   :  { %1708 = vmatpush.bf16.msrb.mxu1 %v2517_v0  ;;  %v360_v0 = vperm.slane %v319_v25, 1 }
  0x94   :  { %1762 = vmatpush.bf16.msrb.mxu2 %v2521_v62 }
  0x95   :  { %1816 = vmatpush.bf16.msrb.mxu3 %v2525_v1  ;;  %2349 = vmatmul.msk.bf16.vlgmr.msrb.gmra.mxu0 %vm124_vm0, %v2722_v18 }
  0x96   :  { %2366 = vmatmul.msk.bf16.vlgmr.msrb.gmra.mxu1 %vm124_vm0, %v2722_v18 }
  0x97   :  { %2383 = vmatmul.msk.bf16.vlgmr.msrb.gmra.mxu2 %vm124_vm0, %v2722_v18 }
  0x98   :  { %2400 = vmatmul.msk.bf16.vlgmr.msrb.gmra.mxu3 %vm124_vm0, %v2722_v18  ;;  %v265_v18 = vld [vmem:[#allocation8 + $0x6] sm:$0x3] }
  0x99   :  { %v266_v27 = vperm.slane %v265_v18, 0  ;;  %v306_v55 = vperm.slane %v265_v18, 1 }
  0xa2   :  { %v137_v2 = vpop.f32.mrf.mxu0 }
  0xa3   :  { %v192_v3 = vpop.f32.mrf.mxu1  ;;  %v138_v23 = vadd.f32 %v137_v2, %v99_v15 }
  0xa4   :  { %v193_v24 = vadd.f32 %v192_v3, %v158_v16 }
  0xa5   :  { %v141_v28 = vmax.f32 %v138_v23, 0.0  ;;  %v646_v23 = vperm.slane %v645_v12, 0 }
  0xa6   :  { %v196_v29 = vmax.f32 %v193_v24, 0.0 }
  0xa7   :  { %v143_v42 = vmul.f32 %v2788_v31, %v141_v28 }
  0xa8   :  { %v197_v43 = vmul.f32 %v196_v29, %v2788_v31 }
  0xa9   :  { %v145_v51 = vmul.f32 %v144_v38, %v143_v42 }
  0xaa   :  { %v246_v4 = vpop.f32.mrf.mxu2  ;;  %v139_v6 = vpop.f32.mrf.mxu0  ;;  %v199_v52 = vmul.f32 %v198_v39, %v197_v43  ;;  %v578_v39 = vperm.slane %v2793_v56, 1 }
  0xab   :  { %v300_v5 = vpop.f32.mrf.mxu3  ;;  %v194_v7 = vpop.f32.mrf.mxu1  ;;  %v247_v26 = vadd.f32 %v246_v4, %v212_v19  ;;  %v591_v6 = vld [vmem:[#allocation8 + $0x12] sm:$0x3] }
  0xac   :  { %v301_v35 = vadd.f32 %v300_v5, %v266_v27  ;;  %v200_v2 = vadd.f32 %v199_v52, %v145_v51  ;;  %v536_v5 = vperm.slane %v2793_v56, 0  ;;  %v592_v16 = vperm.slane %v591_v6, 0 }
  0xad   :  { %v250_v34 = vmax.f32 %v247_v26, 0.0  ;;  %v699_v26 = vld [vmem:[#allocation8 + $0x16] sm:$0x3]  ;;  %v632_v52 = vperm.slane %v591_v6, 1  ;;  %v969_v6 = vld [vmem:[#allocation8 + $0x20] sm:$0x3] }
  0xae   :  { %v304_v48 = vmax.f32 %v301_v35, 0.0  ;;  %v700_v38 = vperm.slane %v699_v26, 0 }
  0xaf   :  { %v251_v46 = vmul.f32 %v250_v34, %v2788_v31  ;;  %v753_v34 = vld [vmem:[#allocation8 + $0x18] sm:$0x3] }
  0xb0   :  { %v305_v59 = vmul.f32 %v304_v48, %v2788_v31 }
  0xb1   :  { %v253_v58 = vmul.f32 %v252_v47, %v251_v46 }
  0xb2   :  { %v248_v8 = vpop.f32.mrf.mxu2  ;;  %v354_v10 = vpop.f32.mrf.mxu0 }
  0xb3   :  { %v302_v9 = vpop.f32.mrf.mxu3  ;;  %v408_v11 = vpop.f32.mrf.mxu1  ;;  %v355_v44 = vadd.f32 %v354_v10, %v320_v30  ;;  %v254_v7 = vadd.f32 %v253_v58, %v200_v2  ;;  %v307_v8 = vmul.f32 %v306_v55, %v305_v59  ;;  %v686_v58 = vperm.slane %v645_v12, 1 }
  0xb4   :  { %v409_v54 = vadd.f32 %v408_v11, %v374_v45  ;;  %v414_v11 = vperm.slane %v373_v32, 1  ;;  %v522_v32 = vperm.slane %v481_v50, 1  ;;  %v2805_v45 = vld [vmem:[#allocation8 + $0x1a] sm:$0x3] }
  0xb5   :  { %v358_v53 = vmax.f32 %v355_v44, 0.0  ;;  %v754_v44 = vperm.slane %v753_v34, 0 }
  0xb6   :  { %v412_v4 = vmax.f32 %v409_v54, 0.0 }
  0xb7   :  { %v359_v3 = vmul.f32 %v358_v53, %v2788_v31 }
  0xb8   :  { %v413_v14 = vmul.f32 %v412_v4, %v2788_v31  ;;  %v740_v4 = vperm.slane %v699_v26, 1  ;;  %v1079_v26 = vld [vmem:[#allocation8 + $0x24] sm:$0x3] }
  0xb9   :  { %v361_v13 = vmul.f32 %v360_v0, %v359_v3  ;;  %v915_v0 = vld [vmem:[#allocation8 + $0x1e] sm:$0x3] }
  0xba   :  { %v462_v17 = vpop.f32.mrf.mxu2  ;;  %v356_v21 = vpop.f32.mrf.mxu0 }
  0xbb   :  { %v516_v20 = vpop.f32.mrf.mxu3  ;;  %v410_v22 = vpop.f32.mrf.mxu1  ;;  %v463_v60 = vadd.f32 %v462_v17, %v428_v49  ;;  %v468_v17 = vperm.slane %v427_v40, 1  ;;  %v308_v21 = vadd.f32 %v307_v8, %v254_v7 }
  0xbc   :  { %v517_v10 = vadd.f32 %v516_v20, %v482_v61  ;;  %v415_v20 = vmul.f32 %v414_v11, %v413_v14 }
  0xbd   :  { %v466_v9 = vmax.f32 %v463_v60, 0.0  ;;  %v362_v28 = vadd.f32 %v361_v13, %v308_v21  ;;  %v794_v13 = vperm.slane %v753_v34, 1  ;;  %v1025_v21 = vld [vmem:[#allocation8 + $0x22] sm:$0x3] }
  0xbe   :  { %v520_v22 = vmax.f32 %v517_v10, 0.0  ;;  %v916_v10 = vperm.slane %v915_v0, 0 }
  0xbf   :  { %v467_v18 = vmul.f32 %v466_v9, %v2788_v31  ;;  %v416_v40 = vadd.f32 %v415_v20, %v362_v28 }
  0xc1   :  { %v469_v35 = vmul.f32 %v468_v17, %v467_v18 }
  0xc2   :  { %v464_v33 = vpop.f32.mrf.mxu2  ;;  %v570_v37 = vpop.f32.mrf.mxu0 }
  0xc3   :  { %v518_v36 = vpop.f32.mrf.mxu3  ;;  %v626_v41 = vpop.f32.mrf.mxu1  ;;  %v571_v15 = vadd.f32 %v570_v37, %v536_v5  ;;  %v2800_v33 = vld [vmem:[#allocation9 + $0x8] sm:$0xff] }
  0xc4   :  { %v627_v30 = vadd.f32 %v626_v41, %v592_v16  ;;  %v521_v36 = vmul.f32 %v520_v22, %v2788_v31  ;;  %v470_v41 = vadd.f32 %v469_v35, %v416_v40  ;;  %v861_v31 = vld [vmem:[#allocation8 + $0x1c] sm:$0x3]  ;;  %v1133_v40 = vld [vmem:[#allocation8 + $0x26] sm:$0x3] }
  0xc5   :  { %v574_v29 = vmax.f32 %v571_v15, 0.0 }
  0xc6   :  { %v630_v43 = vmax.f32 %v627_v30, 0.0  ;;  %v523_v47 = vmul.f32 %v522_v32, %v521_v36  ;;  %v902_v30 = vperm.slane %v861_v31, 1 }
  0xc7   :  { %v577_v42 = vmul.f32 %v2800_v33, %v574_v29  ;;  %v1026_v29 = vperm.slane %v1025_v21, 0 }
  0xc8   :  { %v631_v55 = vmul.f32 %v630_v43, %v2800_v33  ;;  %v524_v59 = vadd.f32 %v523_v47, %v470_v41  ;;  %v956_v41 = vperm.slane %v915_v0, 1  ;;  %v2815_v47 = vld [vmem:[#allocation9 + $0x10] sm:$0xff] }
  0xc9   :  { %v579_v54 = vmul.f32 %v578_v39, %v577_v42 }
  0xca   :  { %v680_v57 = vpop.f32.mrf.mxu2  ;;  %v572_v63 = vpop.f32.mrf.mxu0 }
  0xcb   :  { %v734_v62 = vpop.f32.mrf.mxu3  ;;  %v628_v1 = vpop.f32.mrf.mxu1  ;;  %v681_v37 = vadd.f32 %v680_v57, %v646_v23  ;;  %v808_v57 = vperm.slane %v2805_v45, 0  ;;  %v862_v63 = vperm.slane %v861_v31, 0  ;;  %v1012_v31 = vperm.slane %v969_v6, 1 }
  0xcc   :  { %v735_v49 = vadd.f32 %v734_v62, %v700_v38  ;;  %v580_v1 = vadd.f32 %v579_v54, %v524_v59  ;;  %v633_v62 = vmul.f32 %v632_v52, %v631_v55  ;;  %v1134_v52 = vperm.slane %v1133_v40, 0 }
  0xcd   :  { %v684_v48 = vmax.f32 %v681_v37, 0.0  ;;  %v1080_v37 = vperm.slane %v1079_v26, 0 }
  0xce   :  { %v738_v61 = vmax.f32 %v735_v49, 0.0  ;;  %v634_v15 = vadd.f32 %v633_v62, %v580_v1  ;;  %v1066_v62 = vperm.slane %v1025_v21, 1 }
  0xcf   :  { %v685_v60 = vmul.f32 %v684_v48, %v2800_v33  ;;  %v1187_v48 = vld [vmem:[#allocation8 + $0x28] sm:$0x3] }
  0xd0   :  { %v739_v8 = vmul.f32 %v738_v61, %v2800_v33 }
  0xd1   :  { %v687_v7 = vmul.f32 %v686_v58, %v685_v60  ;;  %v1241_v58 = vld [vmem:[#allocation8 + $0x2a] sm:$0x3] }
  0xd2   :  { %v682_v19 = vpop.f32.mrf.mxu2  ;;  %v788_v25 = vpop.f32.mrf.mxu0  ;;  %v741_v22 = vmul.f32 %v740_v4, %v739_v8 }
  0xd3   :  { %v736_v24 = vpop.f32.mrf.mxu3  ;;  %v842_v27 = vpop.f32.mrf.mxu1  ;;  %v789_v56 = vadd.f32 %v788_v25, %v754_v44  ;;  %v970_v19 = vperm.slane %v969_v6, 0  ;;  %v688_v18 = vadd.f32 %v687_v7, %v634_v15  ;;  %v848_v25 = vperm.slane %v2805_v45, 1 }
  0xd4   :  { %v843_v3 = vadd.f32 %v842_v27, %v808_v57  ;;  %v1242_v6 = vperm.slane %v1241_v58, 0  ;;  %v1120_v7 = vperm.slane %v1079_v26, 1 }
  0xd5   :  { %v792_v2 = vmax.f32 %v789_v56, 0.0  ;;  %v742_v34 = vadd.f32 %v741_v22, %v688_v18  ;;  %v1188_v56 = vperm.slane %v1187_v48, 0 }
  0xd6   :  { %v846_v17 = vmax.f32 %v843_v3, 0.0  ;;  %v1295_v3 = vld [vmem:[#allocation8 + $0x2c] sm:$0x3] }
  0xd7   :  { %v793_v16 = vmul.f32 %v792_v2, %v2800_v33 }
  0xd8   :  { %v847_v28 = vmul.f32 %v846_v17, %v2800_v33  ;;  %v1174_v17 = vperm.slane %v1133_v40, 1 }
  0xd9   :  { %v795_v27 = vmul.f32 %v794_v13, %v793_v16 }
  0xda   :  { %v896_v46 = vpop.f32.mrf.mxu2  ;;  %v790_v51 = vpop.f32.mrf.mxu0  ;;  %v849_v44 = vmul.f32 %v848_v25, %v847_v28 }
  0xdb   :  { %v950_v50 = vpop.f32.mrf.mxu3  ;;  %v844_v53 = vpop.f32.mrf.mxu1  ;;  %v897_v9 = vadd.f32 %v896_v46, %v862_v63  ;;  %v796_v43 = vadd.f32 %v795_v27, %v742_v34 }
  0xdc   :  { %v951_v24 = vadd.f32 %v950_v50, %v916_v10 }
  0xdd   :  { %v900_v23 = vmax.f32 %v897_v9, 0.0  ;;  %v850_v53 = vadd.f32 %v849_v44, %v796_v43 }
  0xde   :  { %v954_v36 = vmax.f32 %v951_v24, 0.0 }
  0xdf   :  { %v901_v35 = vmul.f32 %v900_v23, %v2800_v33 }
  0xe0   :  { %v955_v50 = vmul.f32 %v954_v36, %v2800_v33 }
  0xe1   :  { %v903_v49 = vmul.f32 %v902_v30, %v901_v35  ;;  %v1403_v30 = vld [vmem:[#allocation8 + $0x30] sm:$0x3] }
  0xe2   :  { %v898_v5 = vpop.f32.mrf.mxu2  ;;  %v1004_v12 = vpop.f32.mrf.mxu0  ;;  %v957_v60 = vmul.f32 %v956_v41, %v955_v50  ;;  %v1336_v41 = vperm.slane %v1295_v3, 1 }
  0xe3   :  { %v952_v11 = vpop.f32.mrf.mxu3  ;;  %v1060_v14 = vpop.f32.mrf.mxu1  ;;  %v1005_v20 = vadd.f32 %v1004_v12, %v970_v19  ;;  %v904_v59 = vadd.f32 %v903_v49, %v850_v53  ;;  %v1349_v12 = vld [vmem:[#allocation8 + $0x2e] sm:$0x3] }
  0xe4   :  { %v1061_v46 = vadd.f32 %v1060_v14, %v1026_v29  ;;  %v1296_v11 = vperm.slane %v1295_v3, 0  ;;  %v1350_v23 = vperm.slane %v1349_v12, 0 }
  0xe5   :  { %v1008_v45 = vmax.f32 %v1005_v20, 0.0  ;;  %v958_v8 = vadd.f32 %v957_v60, %v904_v59  ;;  %v1228_v20 = vperm.slane %v1187_v48, 1  ;;  %v2825_v59 = vld [vmem:[#allocation9 + $0x18] sm:$0xff] }
  0xe6   :  { %v1064_v55 = vmax.f32 %v1061_v46, 0.0 }
  0xe7   :  { %v1011_v54 = vmul.f32 %v2815_v47, %v1008_v45 }
  0xe8   :  { %v1065_v4 = vmul.f32 %v1064_v55, %v2815_v47 }
  0xe9   :  { %v1013_v33 = vmul.f32 %v1012_v31, %v1011_v54  ;;  %v1513_v31 = vld [vmem:[#allocation8 + $0x34] sm:$0x3] }
  0xea   :  { %v1114_v32 = vpop.f32.mrf.mxu2  ;;  %v1006_v39 = vpop.f32.mrf.mxu0  ;;  %v1067_v14 = vmul.f32 %v1066_v62, %v1065_v4 }
  0xeb   :  { %v1168_v38 = vpop.f32.mrf.mxu3  ;;  %v1062_v42 = vpop.f32.mrf.mxu1  ;;  %v1115_v51 = vadd.f32 %v1114_v32, %v1080_v37  ;;  %v1014_v13 = vadd.f32 %v1013_v33, %v958_v8  ;;  %v1459_v32 = vld [vmem:[#allocation8 + $0x32] sm:$0x3] }
  0xec   :  { %v1169_v63 = vadd.f32 %v1168_v38, %v1134_v52  ;;  %v1404_v38 = vperm.slane %v1403_v30, 0  ;;  %v1282_v42 = vperm.slane %v1241_v58, 1  ;;  %v1460_v43 = vperm.slane %v1459_v32, 0 }
  0xed   :  { %v1118_v61 = vmax.f32 %v1115_v51, 0.0  ;;  %v1068_v27 = vadd.f32 %v1067_v14, %v1014_v13  ;;  %v1621_v14 = vld [vmem:[#allocation8 + $0x38] sm:$0x3] }
  0xee   :  { %v1172_v10 = vmax.f32 %v1169_v63, 0.0  ;;  %v1514_v63 = vperm.slane %v1513_v31, 0 }
  0xef   :  { %v1119_v9 = vmul.f32 %v1118_v61, %v2815_v47  ;;  %v1390_v61 = vperm.slane %v1349_v12, 1 }
  0xf0   :  { %v1173_v18 = vmul.f32 %v1172_v10, %v2815_v47 }
  0xf1   :  { %v1121_v21 = vmul.f32 %v1120_v7, %v1119_v9 }
  0xf2   :  { %v1116_v57 = vpop.f32.mrf.mxu2  ;;  %v1222_v1 = vpop.f32.mrf.mxu0  ;;  %v1175_v35 = vmul.f32 %v1174_v17, %v1173_v18  ;;  %v1622_v18 = vperm.slane %v1621_v14, 0 }
  0xf3   :  { %v1170_v0 = vpop.f32.mrf.mxu3  ;;  %v1276_v2 = vpop.f32.mrf.mxu1  ;;  %v1223_v5 = vadd.f32 %v1222_v1, %v1188_v56  ;;  %v1122_v34 = vadd.f32 %v1121_v21, %v1068_v27  ;;  %v1567_v56 = vld [vmem:[#allocation8 + $0x36] sm:$0x3] }
  0xf4   :  { %v1277_v16 = vadd.f32 %v1276_v2, %v1242_v6  ;;  %v1568_v0 = vperm.slane %v1567_v56, 0  ;;  %v1446_v2 = vperm.slane %v1403_v30, 1 }
  0xf5   :  { %v1226_v15 = vmax.f32 %v1223_v5, 0.0  ;;  %v1176_v45 = vadd.f32 %v1175_v35, %v1122_v34  ;;  %v1729_v34 = vld [vmem:[#allocation8 + $0x3c] sm:$0x3] }
  0xf6   :  { %v1280_v29 = vmax.f32 %v1277_v16, 0.0 }
  0xf7   :  { %v1227_v28 = vmul.f32 %v1226_v15, %v2815_v47  ;;  %v1675_v15 = vld [vmem:[#allocation8 + $0x3a] sm:$0x3] }
  0xf8   :  { %v1281_v40 = vmul.f32 %v1280_v29, %v2815_v47 }
  0xf9   :  { %v1229_v39 = vmul.f32 %v1228_v20, %v1227_v28  ;;  %v1608_v28 = vperm.slane %v1567_v56, 1 }
  0xfa   :  { %v1330_v19 = vpop.f32.mrf.mxu2  ;;  %v1224_v25 = vpop.f32.mrf.mxu0  ;;  %v1283_v54 = vmul.f32 %v1282_v42, %v1281_v40 }
  0xfb   :  { %v1331_v22 = vadd.f32 %v1330_v19, %v1296_v11  ;;  %v1384_v24 = vpop.f32.mrf.mxu3  ;;  %v1278_v26 = vpop.f32.mrf.mxu1  ;;  %v1230_v53 = vadd.f32 %v1229_v39, %v1176_v45  ;;  %v1554_v19 = vperm.slane %v1513_v31, 1  ;;  %v1662_v39 = vperm.slane %v1621_v14, 1 }
  0xfc   :  { %v1385_v37 = vadd.f32 %v1384_v24, %v1350_v23  ;;  %v1676_v24 = vperm.slane %v1675_v15, 0 }
  0xfd   :  { %v1334_v36 = vmax.f32 %v1331_v22, 0.0  ;;  %v1284_v1 = vadd.f32 %v1283_v54, %v1230_v53 }
  0xfe   :  { %v1388_v49 = vmax.f32 %v1385_v37, 0.0  ;;  %v1783_v37 = vld [vmem:[#allocation8 + $0x3e] sm:$0x3] }
  0xff   :  { %v1335_v46 = vmul.f32 %v1334_v36, %v2815_v47 }
 0x100   :  { %v1389_v60 = vmul.f32 %v1388_v49, %v2815_v47  ;;  %v1500_v47 = vperm.slane %v1459_v32, 1  ;;  %v1716_v49 = vperm.slane %v1675_v15, 1 }
 0x101   :  { %v1337_v58 = vmul.f32 %v1336_v41, %v1335_v46  ;;  %v1784_v46 = vperm.slane %v1783_v37, 0 }
 0x102   :  { %v1332_v44 = vpop.f32.mrf.mxu2  ;;  %v1438_v50 = vpop.f32.mrf.mxu0  ;;  %v1391_v5 = vmul.f32 %v1390_v61, %v1389_v60  ;;  %v1770_v60 = vperm.slane %v1729_v34, 1 }
 0x103   :  { %v1386_v48 = vpop.f32.mrf.mxu3  ;;  %v1439_v51 = vadd.f32 %v1438_v50, %v1404_v38  ;;  %v1494_v52 = vpop.f32.mrf.mxu1  ;;  %v1338_v4 = vadd.f32 %v1337_v58, %v1284_v1  ;;  %v1730_v44 = vperm.slane %v1729_v34, 0 }
 0x104   :  { %v1495_v55 = vadd.f32 %v1494_v52, %v1460_v43 }
 0x105   :  { %v1442_v57 = vmax.f32 %v1439_v51, 0.0  ;;  %v1392_v16 = vadd.f32 %v1391_v5, %v1338_v4 }
 0x106   :  { %v1498_v3 = vmax.f32 %v1495_v55, 0.0 }
 0x107   :  { %v1445_v62 = vmul.f32 %v2825_v59, %v1442_v57 }
 0x108   :  { %v1499_v13 = vmul.f32 %v1498_v3, %v2825_v59 }
 0x109   :  { %v1447_v11 = vmul.f32 %v1446_v2, %v1445_v62 }
 0x10a   :  { %v1548_v33 = vpop.f32.mrf.mxu2  ;;  %v1440_v8 = vpop.f32.mrf.mxu0  ;;  %v1501_v23 = vmul.f32 %v1500_v47, %v1499_v13 }
 0x10b   :  { %v1549_v6 = vadd.f32 %v1548_v33, %v1514_v63  ;;  %v1602_v7 = vpop.f32.mrf.mxu3  ;;  %v1496_v10 = vpop.f32.mrf.mxu1  ;;  %v1448_v22 = vadd.f32 %v1447_v11, %v1392_v16  ;;  %v1824_v63 = vperm.slane %v1783_v37, 1 }
 0x10c   :  { %v1603_v9 = vadd.f32 %v1602_v7, %v1568_v0 }
 0x10d   :  { %v1552_v12 = vmax.f32 %v1549_v6, 0.0  ;;  %v1502_v35 = vadd.f32 %v1501_v23, %v1448_v22  ;;  %v2540_v6 = vld [vmem:[%s2846_s4] ss:$0 sm:$0xff] }
 0x10e   :  { %v1606_v21 = vmax.f32 %v1603_v9, 0.0 }
 0x10f   :  { %v1553_v17 = vmul.f32 %v1552_v12, %v2825_v59 }
 0x110   :  { %v1607_v27 = vmul.f32 %v1606_v21, %v2825_v59 }
 0x111   :  { %v1555_v26 = vmul.f32 %v1554_v19, %v1553_v17 }
 0x112   :  { %v1550_v25 = vpop.f32.mrf.mxu2  ;;  %v1656_v29 = vpop.f32.mrf.mxu0  ;;  %v1609_v42 = vmul.f32 %v1608_v28, %v1607_v27 }
 0x113   :  { %v1604_v20 = vpop.f32.mrf.mxu3  ;;  %v1657_v30 = vadd.f32 %v1656_v29, %v1622_v18  ;;  %v1710_v32 = vpop.f32.mrf.mxu1  ;;  %v1556_v40 = vadd.f32 %v1555_v26, %v1502_v35 }
 0x114   :  { %v1711_v36 = vadd.f32 %v1710_v32, %v1676_v24 }
 0x115   :  { %v1660_v38 = vmax.f32 %v1657_v30, 0.0  ;;  %v1610_v51 = vadd.f32 %v1609_v42, %v1556_v40 }
 0x116   :  { %v1714_v43 = vmax.f32 %v1711_v36, 0.0 }
 0x117   :  { %v1661_v45 = vmul.f32 %v1660_v38, %v2825_v59 }
 0x118   :  { %v1715_v41 = vmul.f32 %v1714_v43, %v2825_v59 }
 0x119   :  { %v1663_v48 = vmul.f32 %v1662_v39, %v1661_v45 }
 0x11a   :  { %v1764_v50 = vpop.f32.mrf.mxu2  ;;  %v1658_v53 = vpop.f32.mrf.mxu0  ;;  %v1717_v57 = vmul.f32 %v1716_v49, %v1715_v41 }
 0x11b   :  { %v1765_v52 = vadd.f32 %v1764_v50, %v1730_v44  ;;  %v1818_v31 = vpop.f32.mrf.mxu3  ;;  %v1712_v55 = vpop.f32.mrf.mxu1  ;;  %v1664_v56 = vadd.f32 %v1663_v48, %v1610_v51 }
 0x11c   :  { %v1819_v54 = vadd.f32 %v1818_v31, %v1784_v46 }
 0x11d   :  { %v1768_v58 = vmax.f32 %v1765_v52, 0.0  ;;  %v1718_v62 = vadd.f32 %v1717_v57, %v1664_v56 }
 0x11e   :  { %v1822_v61 = vmax.f32 %v1819_v54, 0.0 }
 0x11f   :  { %v1769_v0 = vmul.f32 %v1768_v58, %v2825_v59 }
 0x120   :  { %v1823_v1 = vmul.f32 %v1822_v61, %v2825_v59 }
 0x121   :  { %v1771_v2 = vmul.f32 %v1770_v60, %v1769_v0 }
 0x122   :  { %v1825_v3 = vmul.f32 %v1824_v63, %v1823_v1  ;;  %v1766_v33 = vpop.f32.mrf.mxu2 }
 0x123   :  { %v1772_v4 = vadd.f32 %v1771_v2, %v1718_v62  ;;  %v1820_v5 = vpop.f32.mrf.mxu3 }
 0x125   :  { %v1826_v7 = vadd.f32 %v1825_v3, %v1772_v4 }
 0x127   :  { %v1836_v8 = vadd.f32 %v2540_v6, %v1826_v7 }
 0x129   :  { %1837 = vst [vmem:[#allocation11] sm:$0xff] %v1836_v8 }
 0x12a   :  { %1848 = dma.vmem_to_hbm [thread:$0]  %s1844_s18, 128, %s1846_s21, [#allocation5]  }
 0x12b   :  { %2667 = dma.done.wait [#allocation5], 128  }
 0x12c   :  { %2668 = vsyncadd [#allocation5], 4294967168 }
 0x12d   :  { %1853 = vsyncpa [#allocation4], 1 }
 0x12e   :  { %1854 = vsyncpa [#allocation7], 1 }
 0x12f   :  { %1855 = vsyncpa [#allocation10], 1 }
 0x130   :  { %1856 = vsyncpa [#allocation5], 1 }

</bundles_post_ra>
